<compile_context>
chip_gen: v7x
topology: tpu7x:2x2x1
jax: 0.10.0
libtpu: 0.0.40
codegen_flags: <defaults>
</compile_context>

<pallas_src>
import functools

import jax
import jax.numpy as jnp
from jax import lax
from jax.experimental import pallas as pl
from jax.experimental.pallas import tpu as pltpu


# ----------------------------- Pallas kernel ---------------------------------


def _make_kernel(h_size: int, seq: int, batch: int):
    H = h_size
    S = seq
    B = batch
    G = 4 * H

    def kernel(
        xflat_ref,    # (S*B, In)
        h0_ref,       # (L=2, B, H)
        c0_ref,       # (L=2, B, H)
        wih0_ref,     # (In, 4H)   g-gate cols pre-scaled by 2
        whh0_ref,     # (H, 4H)    g-gate cols pre-scaled by 2
        b0_ref,       # (1, 4H)    (= b_ih_l0 + b_hh_l0, g cols scaled)
        wih1_ref,     # (H, 4H)    g-gate cols pre-scaled by 2
        whh1_ref,     # (H, 4H)    g-gate cols pre-scaled by 2
        b1_ref,       # (1, 4H)    (= b_ih_l1 + b_hh_l1, g cols scaled)
        fc1w_ref,     # (H, 64)
        fc1b_ref,     # (1, 64)
        fc2w_ref,     # (1, 64)    fc2 weight as a row (VPU reduce, no MXU)
        fc2b_ref,     # (1, 1)
        out_ref,      # (B, 1)
        xproj_ref,    # VMEM scratch (S*B, 4H)
    ):
        whh0 = whh0_ref[...]
        wih1 = wih1_ref[...]
        whh1 = whh1_ref[...]

        # Hoisted layer-0 input projection: one big MXU matmul, bias folded in.
        xproj_ref[...] = (
            jnp.dot(xflat_ref[...], wih0_ref[...],
                    preferred_element_type=jnp.float32)
            + b0_ref[...]
        )

        # Hoist the layer-1 bias broadcast out of the unrolled loop.
        b1_full = jnp.broadcast_to(b1_ref[...], (B, G))

        def gates_to_hc(g, c):
            # Single full-vreg sigmoid on EUP; g-gate columns were pre-scaled by
            # 2 in the weights, so tanh(x) = 2*sigmoid(2x) - 1 (exact identity).
            # PyTorch gate order: i, f, g, o.
            sg = jax.nn.sigmoid(g)
            i_g = sg[:, 0 * H:1 * H]
            f_g = sg[:, 1 * H:2 * H]
            g_g = 2.0 * sg[:, 2 * H:3 * H] - 1.0
            o_g = sg[:, 3 * H:4 * H]
            c_new = f_g * c + i_g * g_g
            h_new = o_g * jnp.tanh(c_new)
            return h_new, c_new

        def step(t, carry):
            h_l0, c_l0, h_l1, c_l1 = carry

            # Layer-1 recurrent dot depends only on the *previous* h_l1:
            # issue it first so the MXU push overlaps layer-0's gate math.
            g1_rec = jnp.dot(h_l1, whh1, preferred_element_type=jnp.float32)

            # Layer 0: only the recurrent dot remains per step.
            off = pl.multiple_of(t * B, B)
            g0 = xproj_ref[pl.ds(off, B), :] + jnp.dot(
                h_l0, whh0, preferred_element_type=jnp.float32)
            h_l0, c_l0 = gates_to_hc(g0, c_l0)

            # Layer 1: input dot on the freshly computed h_l0, no lane concat.
            # TODO(synk): inter-layer dropout(p=0.2) and fc Dropout(0.2) skipped (eval mode).
            g1 = g1_rec + jnp.dot(
                h_l0, wih1, preferred_element_type=jnp.float32) + b1_full
            h_l1, c_l1 = gates_to_hc(g1, c_l1)

            return (h_l0, c_l0, h_l1, c_l1)

        init = (h0_ref[0], c0_ref[0], h0_ref[1], c0_ref[1])
        _, _, h_last, _ = lax.fori_loop(0, S, step, init, unroll=True)

        # fc: Linear(H, 64) -> ReLU -> (Dropout skipped) -> Linear(64, 1)
        hid = jnp.maximum(
            jnp.dot(h_last, fc1w_ref[...], preferred_element_type=jnp.float32)
            + fc1b_ref[...],
            0.0,
        )
        # fc2 as VPU multiply + lane reduce (1-column matmul wastes an MXU trip).
        out_ref[...] = (
            jnp.sum(hid * fc2w_ref[...], axis=-1, keepdims=True) + fc2b_ref[...]
        )

    return kernel


# --------------------------- Parameter layout prep ----------------------------


def prepare_params(params, h_size):
    """One-time layout prep (outside the per-call jit path).

    - Transposes weights so every in-kernel matmul is (rows, in) @ (in, out).
    - Sums the ih/hh biases.
    - Pre-scales the g-gate columns (2H:3H) of every LSTM weight/bias by 2 so the
      kernel can use tanh(x) = 2*sigmoid(2x) - 1 with a single sigmoid pass.
    - Keeps fc2's weight as a (1, 64) row for the in-kernel VPU reduce.
    """
    H = h_size
    gate_scale = jnp.concatenate(
        [jnp.ones((2 * H,), jnp.float32),
         jnp.full((H,), 2.0, jnp.float32),
         jnp.ones((H,), jnp.float32)]
    )  # (4H,)

    def prep_w(w):   # (4H, in) -> (in, 4H), g cols scaled
        return w.T * gate_scale

    def prep_b(b_ih, b_hh):  # -> (1, 4H), g cols scaled
        return ((b_ih + b_hh) * gate_scale).reshape(1, -1)

    return {
        "wih0": prep_w(params["w_ih_l0"]),                       # (In, 4H)
        "whh0": prep_w(params["w_hh_l0"]),                       # (H, 4H)
        "b0": prep_b(params["b_ih_l0"], params["b_hh_l0"]),      # (1, 4H)
        "wih1": prep_w(params["w_ih_l1"]),                       # (H, 4H)
        "whh1": prep_w(params["w_hh_l1"]),                       # (H, 4H)
        "b1": prep_b(params["b_ih_l1"], params["b_hh_l1"]),      # (1, 4H)
        "fc1w": params["fc1_w"].T,                               # (H, 64)
        "fc1b": params["fc1_b"].reshape(1, -1),                  # (1, 64)
        "fc2w": params["fc2_w"].reshape(1, -1),                  # (1, 64)
        "fc2b": params["fc2_b"].reshape(1, 1),                   # (1, 1)
    }


# ------------------------------- Wrapper --------------------------------------


@functools.partial(jax.jit, static_argnames=("h_size",))
def last_decoder_forward(x, h0, c0, prepped, *, h_size):
    """x: (S, B, In) f32; h0, c0: (2, B, H); prepped = prepare_params(...). Returns (B, 1)."""
    S, B, In = x.shape

    # Pad batch to a sublane multiple (>= 8) so every (B, .) tile is aligned.
    B_pad = max(8, ((B + 7) // 8) * 8)
    pad = B_pad - B
    if pad:
        x = jnp.pad(x, ((0, 0), (0, pad), (0, 0)))
        h0 = jnp.pad(h0, ((0, 0), (0, pad), (0, 0)))
        c0 = jnp.pad(c0, ((0, 0), (0, pad), (0, 0)))

    kin = (
        x.reshape(S * B_pad, In),     # flatten for the hoisted input projection
        h0,
        c0,
        prepped["wih0"],
        prepped["whh0"],
        prepped["b0"],
        prepped["wih1"],
        prepped["whh1"],
        prepped["b1"],
        prepped["fc1w"],
        prepped["fc1b"],
        prepped["fc2w"],
        prepped["fc2b"],
    )

    vmem = pl.BlockSpec(memory_space=pltpu.MemorySpace.VMEM)
    out = pl.pallas_call(
        _make_kernel(h_size, S, B_pad),
        out_shape=jax.ShapeDtypeStruct((B_pad, 1), jnp.float32),
        in_specs=[vmem] * len(kin),
        out_specs=vmem,
        scratch_shapes=[pltpu.VMEM((S * B_pad, 4 * h_size), jnp.float32)],
        # Explicit VMEM budget (tiny here); re-derive if S*B grows (64 MiB on v7x).
        compiler_params=pltpu.CompilerParams(vmem_limit_bytes=32 * 1024 * 1024),
    )(*kin)
    return out[:B]


# --------------------------- Pure-JAX reference --------------------------------


def last_decoder_reference(x, h0, c0, params):
    S = x.shape[0]
    H = h0.shape[-1]

    def cell(x_t, h, c, wih, whh, b_ih, b_hh):
        g = x_t @ wih.T + h @ whh.T + b_ih + b_hh
        i_g = jax.nn.sigmoid(g[:, 0 * H:1 * H])
        f_g = jax.nn.sigmoid(g[:, 1 * H:2 * H])
        g_g = jnp.tanh(g[:, 2 * H:3 * H])
        o_g = jax.nn.sigmoid(g[:, 3 * H:4 * H])
        c_new = f_g * c + i_g * g_g
        return o_g * jnp.tanh(c_new), c_new

    h = [h0[0], h0[1]]
    c = [c0[0], c0[1]]
    for t in range(S):
        inp = x[t]
        h[0], c[0] = cell(inp, h[0], c[0], params["w_ih_l0"], params["w_hh_l0"],
                          params["b_ih_l0"], params["b_hh_l0"])
        h[1], c[1] = cell(h[0], h[1], c[1], params["w_ih_l1"], params["w_hh_l1"],
                          params["b_ih_l1"], params["b_hh_l1"])
    hid = jnp.maximum(h[1] @ params["fc1_w"].T + params["fc1_b"], 0.0)
    return hid @ params["fc2_w"].T + params["fc2_b"]


# ----------------------------------- Main ---------------------------------------


def _init_params(key, inputsize, h_size):
    """Deterministic PyTorch-style uniform(-1/sqrt(H), 1/sqrt(H)) init."""
    scale = 1.0 / jnp.sqrt(jnp.float32(h_size))

    def u(k, shape, s=scale):
        return jax.random.uniform(k, shape, jnp.float32, minval=-s, maxval=s)

    keys = jax.random.split(key, 12)
    params = {
        "w_ih_l0": u(keys[0], (4 * h_size, inputsize)),
        "w_hh_l0": u(keys[1], (4 * h_size, h_size)),
        "b_ih_l0": u(keys[2], (4 * h_size,)),
        "b_hh_l0": u(keys[3], (4 * h_size,)),
        "w_ih_l1": u(keys[4], (4 * h_size, h_size)),
        "w_hh_l1": u(keys[5], (4 * h_size, h_size)),
        "b_ih_l1": u(keys[6], (4 * h_size,)),
        "b_hh_l1": u(keys[7], (4 * h_size,)),
        "fc1_w": u(keys[8], (64, h_size), 1.0 / jnp.sqrt(jnp.float32(h_size))),
        "fc1_b": u(keys[9], (64,), 1.0 / jnp.sqrt(jnp.float32(h_size))),
        "fc2_w": u(keys[10], (1, 64), 1.0 / jnp.sqrt(jnp.float32(64))),
        "fc2_b": u(keys[11], (1,), 1.0 / jnp.sqrt(jnp.float32(64))),
    }
    return params


if __name__ == "__main__":
    # Small shapes consistent with the module's forward:
    #   x: (seq=8, batch=4, inputsize=32), c = (h0, c0) each (num_layers=2, batch=4, h_size=32)
    SEQ, BATCH, INPUTSIZE, H_SIZE, N_LAYERS = 8, 4, 32, 32, 2

    root = jax.random.PRNGKey(0)
    kx, kh, kc, kp = jax.random.split(root, 4)

    x = jax.random.normal(kx, (SEQ, BATCH, INPUTSIZE), jnp.float32)
    h0 = jax.random.normal(kh, (N_LAYERS, BATCH, H_SIZE), jnp.float32)
    c0 = jax.random.normal(kc, (N_LAYERS, BATCH, H_SIZE), jnp.float32)
    params = _init_params(kp, INPUTSIZE, H_SIZE)

    # One-time weight layout prep (hoisted out of the per-call jit path).
    prepped = prepare_params(params, H_SIZE)

    logit = last_decoder_forward(x, h0, c0, prepped, h_size=H_SIZE)
    logit = jax.block_until_ready(logit)

    ref = last_decoder_reference(x, h0, c0, params)
    assert logit.shape == (BATCH, 1), logit.shape
    assert jnp.allclose(logit, ref, rtol=1e-4, atol=5e-5), (logit, ref)

    print("KERNEL_OK")
</pallas_src>

<mosaic_0001>
module attributes {stable_mosaic.version = 11 : i64} {
  func.func @kernel(%arg0: memref<64x32xf32, #tpu.memory_space<vmem>>, %arg1: memref<2x8x32xf32, #tpu.memory_space<vmem>>, %arg2: memref<2x8x32xf32, #tpu.memory_space<vmem>>, %arg3: memref<32x128xf32, #tpu.memory_space<vmem>>, %arg4: memref<32x128xf32, #tpu.memory_space<vmem>>, %arg5: memref<1x128xf32, #tpu.memory_space<vmem>>, %arg6: memref<32x128xf32, #tpu.memory_space<vmem>>, %arg7: memref<32x128xf32, #tpu.memory_space<vmem>>, %arg8: memref<1x128xf32, #tpu.memory_space<vmem>>, %arg9: memref<32x64xf32, #tpu.memory_space<vmem>>, %arg10: memref<1x64xf32, #tpu.memory_space<vmem>>, %arg11: memref<1x64xf32, #tpu.memory_space<vmem>>, %arg12: memref<1x1xf32, #tpu.memory_space<vmem>>, %arg13: memref<8x1xf32, #tpu.memory_space<vmem>>, %arg14: memref<64x128xf32, #tpu.memory_space<vmem>>) attributes {dimension_semantics = [], scalar_prefetch = 0 : i64, scratch_operands = 1 : i64, tpu.core_type = #tpu.core_type<tc>} {
    %c0 = arith.constant 0 : index
    %c0_0 = arith.constant 0 : index
    %0 = vector.load %arg4[%c0, %c0_0] : memref<32x128xf32, #tpu.memory_space<vmem>>, vector<32x128xf32>
    %c0_1 = arith.constant 0 : index
    %c0_2 = arith.constant 0 : index
    %1 = vector.load %arg6[%c0_1, %c0_2] : memref<32x128xf32, #tpu.memory_space<vmem>>, vector<32x128xf32>
    %c0_3 = arith.constant 0 : index
    %c0_4 = arith.constant 0 : index
    %2 = vector.load %arg7[%c0_3, %c0_4] : memref<32x128xf32, #tpu.memory_space<vmem>>, vector<32x128xf32>
    %c0_5 = arith.constant 0 : index
    %c0_6 = arith.constant 0 : index
    %3 = vector.load %arg0[%c0_5, %c0_6] : memref<64x32xf32, #tpu.memory_space<vmem>>, vector<64x32xf32>
    %c0_7 = arith.constant 0 : index
    %c0_8 = arith.constant 0 : index
    %4 = vector.load %arg3[%c0_7, %c0_8] : memref<32x128xf32, #tpu.memory_space<vmem>>, vector<32x128xf32>
    %cst = arith.constant dense<0.000000e+00> : vector<64x128xf32>
    %5 = tpu.matmul %3, %4, %cst {dimension_numbers = #tpu.dot_dimension_numbers<[1], [0], [0], [1], [0, 0, 1, 1], [], []>} : vector<64x32xf32>, vector<32x128xf32>, vector<64x128xf32> -> vector<64x128xf32>
    %c0_9 = arith.constant 0 : index
    %c0_10 = arith.constant 0 : index
    %6 = vector.load %arg5[%c0_9, %c0_10] : memref<1x128xf32, #tpu.memory_space<vmem>>, vector<1x128xf32>
    %7 = vector.broadcast %6 : vector<1x128xf32> to vector<64x128xf32>
    %8 = arith.addf %5, %7 : vector<64x128xf32>
    %c0_11 = arith.constant 0 : index
    %c0_12 = arith.constant 0 : index
    %9 = vector.load %arg14[%c0_11, %c0_12] : memref<64x128xf32, #tpu.memory_space<vmem>>, vector<64x128xf32>
    tpu.vector_store %arg14[%c0_11, %c0_12], %8 {strides = array<i32>} : memref<64x128xf32, #tpu.memory_space<vmem>>, vector<64x128xf32>,
    %c0_13 = arith.constant 0 : index
    %c0_14 = arith.constant 0 : index
    %10 = vector.load %arg8[%c0_13, %c0_14] : memref<1x128xf32, #tpu.memory_space<vmem>>, vector<1x128xf32>
    %11 = vector.shape_cast %10 : vector<1x128xf32> to vector<1x128xf32>
    %12 = vector.broadcast %11 : vector<1x128xf32> to vector<8x128xf32>
    %c0_15 = arith.constant 0 : index
    %c0_16 = arith.constant 0 : index
    %c0_17 = arith.constant 0 : index
    %13 = vector.load %arg1[%c0_15, %c0_16, %c0_17] : memref<2x8x32xf32, #tpu.memory_space<vmem>>, vector<1x8x32xf32>
    %14 = vector.shape_cast %13 : vector<1x8x32xf32> to vector<8x32xf32>
    %c0_18 = arith.constant 0 : index
    %c0_19 = arith.constant 0 : index
    %c0_20 = arith.constant 0 : index
    %15 = vector.load %arg2[%c0_18, %c0_19, %c0_20] : memref<2x8x32xf32, #tpu.memory_space<vmem>>, vector<1x8x32xf32>
    %16 = vector.shape_cast %15 : vector<1x8x32xf32> to vector<8x32xf32>
    %c1 = arith.constant 1 : index
    %c0_21 = arith.constant 0 : index
    %c0_22 = arith.constant 0 : index
    %17 = vector.load %arg1[%c1, %c0_21, %c0_22] : memref<2x8x32xf32, #tpu.memory_space<vmem>>, vector<1x8x32xf32>
    %18 = vector.shape_cast %17 : vector<1x8x32xf32> to vector<8x32xf32>
    %c1_23 = arith.constant 1 : index
    %c0_24 = arith.constant 0 : index
    %c0_25 = arith.constant 0 : index
    %19 = vector.load %arg2[%c1_23, %c0_24, %c0_25] : memref<2x8x32xf32, #tpu.memory_space<vmem>>, vector<1x8x32xf32>
    %20 = vector.shape_cast %19 : vector<1x8x32xf32> to vector<8x32xf32>
    %c0_i32 = arith.constant 0 : i32
    %cst_26 = arith.constant dense<0.000000e+00> : vector<8x128xf32>
    %21 = tpu.matmul %18, %2, %cst_26 {dimension_numbers = #tpu.dot_dimension_numbers<[1], [0], [0], [1], [0, 0, 1, 1], [], []>} : vector<8x32xf32>, vector<32x128xf32>, vector<8x128xf32> -> vector<8x128xf32>
    %c8_i32 = arith.constant 8 : i32
    %22 = arith.muli %c0_i32, %c8_i32 : i32
    %23 = tpu.assume_multiple %22, 8 : i32
    %24 = arith.index_cast %23 : i32 to index
    %c0_27 = arith.constant 0 : index
    %25 = vector.load %arg14[%24, %c0_27] : memref<64x128xf32, #tpu.memory_space<vmem>>, vector<8x128xf32>
    %cst_28 = arith.constant dense<0.000000e+00> : vector<8x128xf32>
    %26 = tpu.matmul %14, %0, %cst_28 {dimension_numbers = #tpu.dot_dimension_numbers<[1], [0], [0], [1], [0, 0, 1, 1], [], []>} : vector<8x32xf32>, vector<32x128xf32>, vector<8x128xf32> -> vector<8x128xf32>
    %27 = arith.addf %25, %26 : vector<8x128xf32>
    %28 = arith.negf %27 : vector<8x128xf32>
    %29 = math.exp %28 : vector<8x128xf32>
    %cst_29 = arith.constant 1.000000e+00 : f32
    %30 = vector.broadcast %cst_29 : f32 to vector<8x128xf32>
    %31 = arith.addf %30, %29 : vector<8x128xf32>
    %32 = arith.divf %30, %31 : vector<8x128xf32>
    %33 = vector.extract_strided_slice %32 {offsets = [0, 0], sizes = [8, 32], strides = [1, 1]} : vector<8x128xf32> to vector<8x32xf32>
    %34 = vector.extract_strided_slice %32 {offsets = [0, 32], sizes = [8, 32], strides = [1, 1]} : vector<8x128xf32> to vector<8x32xf32>
    %35 = vector.extract_strided_slice %32 {offsets = [0, 64], sizes = [8, 32], strides = [1, 1]} : vector<8x128xf32> to vector<8x32xf32>
    %cst_30 = arith.constant 2.000000e+00 : f32
    %36 = vector.broadcast %cst_30 : f32 to vector<8x32xf32>
    %37 = arith.mulf %36, %35 : vector<8x32xf32>
    %cst_31 = arith.constant 1.000000e+00 : f32
    %38 = vector.broadcast %cst_31 : f32 to vector<8x32xf32>
    %39 = arith.subf %37, %38 : vector<8x32xf32>
    %40 = vector.extract_strided_slice %32 {offsets = [0, 96], sizes = [8, 32], strides = [1, 1]} : vector<8x128xf32> to vector<8x32xf32>
    %41 = arith.mulf %34, %16 : vector<8x32xf32>
    %42 = arith.mulf %33, %39 : vector<8x32xf32>
    %43 = arith.addf %41, %42 : vector<8x32xf32>
    %44 = math.tanh %43 : vector<8x32xf32>
    %45 = arith.mulf %40, %44 : vector<8x32xf32>
    %cst_32 = arith.constant dense<0.000000e+00> : vector<8x128xf32>
    %46 = tpu.matmul %45, %1, %cst_32 {dimension_numbers = #tpu.dot_dimension_numbers<[1], [0], [0], [1], [0, 0, 1, 1], [], []>} : vector<8x32xf32>, vector<32x128xf32>, vector<8x128xf32> -> vector<8x128xf32>
    %47 = arith.addf %21, %46 : vector<8x128xf32>
    %48 = arith.addf %47, %12 : vector<8x128xf32>
    %49 = arith.negf %48 : vector<8x128xf32>
    %50 = math.exp %49 : vector<8x128xf32>
    %cst_33 = arith.constant 1.000000e+00 : f32
    %51 = vector.broadcast %cst_33 : f32 to vector<8x128xf32>
    %52 = arith.addf %51, %50 : vector<8x128xf32>
    %53 = arith.divf %51, %52 : vector<8x128xf32>
    %54 = vector.extract_strided_slice %53 {offsets = [0, 0], sizes = [8, 32], strides = [1, 1]} : vector<8x128xf32> to vector<8x32xf32>
    %55 = vector.extract_strided_slice %53 {offsets = [0, 32], sizes = [8, 32], strides = [1, 1]} : vector<8x128xf32> to vector<8x32xf32>
    %56 = vector.extract_strided_slice %53 {offsets = [0, 64], sizes = [8, 32], strides = [1, 1]} : vector<8x128xf32> to vector<8x32xf32>
    %cst_34 = arith.constant 2.000000e+00 : f32
    %57 = vector.broadcast %cst_34 : f32 to vector<8x32xf32>
    %58 = arith.mulf %57, %56 : vector<8x32xf32>
    %cst_35 = arith.constant 1.000000e+00 : f32
    %59 = vector.broadcast %cst_35 : f32 to vector<8x32xf32>
    %60 = arith.subf %58, %59 : vector<8x32xf32>
    %61 = vector.extract_strided_slice %53 {offsets = [0, 96], sizes = [8, 32], strides = [1, 1]} : vector<8x128xf32> to vector<8x32xf32>
    %62 = arith.mulf %55, %20 : vector<8x32xf32>
    %63 = arith.mulf %54, %60 : vector<8x32xf32>
    %64 = arith.addf %62, %63 : vector<8x32xf32>
    %65 = math.tanh %64 : vector<8x32xf32>
    %66 = arith.mulf %61, %65 : vector<8x32xf32>
    %c1_i32 = arith.constant 1 : i32
    %cst_36 = arith.constant dense<0.000000e+00> : vector<8x128xf32>
    %67 = tpu.matmul %66, %2, %cst_36 {dimension_numbers = #tpu.dot_dimension_numbers<[1], [0], [0], [1], [0, 0, 1, 1], [], []>} : vector<8x32xf32>, vector<32x128xf32>, vector<8x128xf32> -> vector<8x128xf32>
    %c8_i32_37 = arith.constant 8 : i32
    %68 = arith.muli %c1_i32, %c8_i32_37 : i32
    %69 = tpu.assume_multiple %68, 8 : i32
    %70 = arith.index_cast %69 : i32 to index
    %c0_38 = arith.constant 0 : index
    %71 = vector.load %arg14[%70, %c0_38] : memref<64x128xf32, #tpu.memory_space<vmem>>, vector<8x128xf32>
    %cst_39 = arith.constant dense<0.000000e+00> : vector<8x128xf32>
    %72 = tpu.matmul %45, %0, %cst_39 {dimension_numbers = #tpu.dot_dimension_numbers<[1], [0], [0], [1], [0, 0, 1, 1], [], []>} : vector<8x32xf32>, vector<32x128xf32>, vector<8x128xf32> -> vector<8x128xf32>
    %73 = arith.addf %71, %72 : vector<8x128xf32>
    %74 = arith.negf %73 : vector<8x128xf32>
    %75 = math.exp %74 : vector<8x128xf32>
    %cst_40 = arith.constant 1.000000e+00 : f32
    %76 = vector.broadcast %cst_40 : f32 to vector<8x128xf32>
    %77 = arith.addf %76, %75 : vector<8x128xf32>
    %78 = arith.divf %76, %77 : vector<8x128xf32>
    %79 = vector.extract_strided_slice %78 {offsets = [0, 0], sizes = [8, 32], strides = [1, 1]} : vector<8x128xf32> to vector<8x32xf32>
    %80 = vector.extract_strided_slice %78 {offsets = [0, 32], sizes = [8, 32], strides = [1, 1]} : vector<8x128xf32> to vector<8x32xf32>
    %81 = vector.extract_strided_slice %78 {offsets = [0, 64], sizes = [8, 32], strides = [1, 1]} : vector<8x128xf32> to vector<8x32xf32>
    %cst_41 = arith.constant 2.000000e+00 : f32
    %82 = vector.broadcast %cst_41 : f32 to vector<8x32xf32>
    %83 = arith.mulf %82, %81 : vector<8x32xf32>
    %cst_42 = arith.constant 1.000000e+00 : f32
    %84 = vector.broadcast %cst_42 : f32 to vector<8x32xf32>
    %85 = arith.subf %83, %84 : vector<8x32xf32>
    %86 = vector.extract_strided_slice %78 {offsets = [0, 96], sizes = [8, 32], strides = [1, 1]} : vector<8x128xf32> to vector<8x32xf32>
    %87 = arith.mulf %80, %43 : vector<8x32xf32>
    %88 = arith.mulf %79, %85 : vector<8x32xf32>
    %89 = arith.addf %87, %88 : vector<8x32xf32>
    %90 = math.tanh %89 : vector<8x32xf32>
    %91 = arith.mulf %86, %90 : vector<8x32xf32>
    %cst_43 = arith.constant dense<0.000000e+00> : vector<8x128xf32>
    %92 = tpu.matmul %91, %1, %cst_43 {dimension_numbers = #tpu.dot_dimension_numbers<[1], [0], [0], [1], [0, 0, 1, 1], [], []>} : vector<8x32xf32>, vector<32x128xf32>, vector<8x128xf32> -> vector<8x128xf32>
    %93 = arith.addf %67, %92 : vector<8x128xf32>
    %94 = arith.addf %93, %12 : vector<8x128xf32>
    %95 = arith.negf %94 : vector<8x128xf32>
    %96 = math.exp %95 : vector<8x128xf32>
    %cst_44 = arith.constant 1.000000e+00 : f32
    %97 = vector.broadcast %cst_44 : f32 to vector<8x128xf32>
    %98 = arith.addf %97, %96 : vector<8x128xf32>
    %99 = arith.divf %97, %98 : vector<8x128xf32>
    %100 = vector.extract_strided_slice %99 {offsets = [0, 0], sizes = [8, 32], strides = [1, 1]} : vector<8x128xf32> to vector<8x32xf32>
    %101 = vector.extract_strided_slice %99 {offsets = [0, 32], sizes = [8, 32], strides = [1, 1]} : vector<8x128xf32> to vector<8x32xf32>
    %102 = vector.extract_strided_slice %99 {offsets = [0, 64], sizes = [8, 32], strides = [1, 1]} : vector<8x128xf32> to vector<8x32xf32>
    %cst_45 = arith.constant 2.000000e+00 : f32
    %103 = vector.broadcast %cst_45 : f32 to vector<8x32xf32>
    %104 = arith.mulf %103, %102 : vector<8x32xf32>
    %cst_46 = arith.constant 1.000000e+00 : f32
    %105 = vector.broadcast %cst_46 : f32 to vector<8x32xf32>
    %106 = arith.subf %104, %105 : vector<8x32xf32>
    %107 = vector.extract_strided_slice %99 {offsets = [0, 96], sizes = [8, 32], strides = [1, 1]} : vector<8x128xf32> to vector<8x32xf32>
    %108 = arith.mulf %101, %64 : vector<8x32xf32>
    %109 = arith.mulf %100, %106 : vector<8x32xf32>
    %110 = arith.addf %108, %109 : vector<8x32xf32>
    %111 = math.tanh %110 : vector<8x32xf32>
    %112 = arith.mulf %107, %111 : vector<8x32xf32>
    %c2_i32 = arith.constant 2 : i32
    %cst_47 = arith.constant dense<0.000000e+00> : vector<8x128xf32>
    %113 = tpu.matmul %112, %2, %cst_47 {dimension_numbers = #tpu.dot_dimension_numbers<[1], [0], [0], [1], [0, 0, 1, 1], [], []>} : vector<8x32xf32>, vector<32x128xf32>, vector<8x128xf32> -> vector<8x128xf32>
    %c8_i32_48 = arith.constant 8 : i32
    %114 = arith.muli %c2_i32, %c8_i32_48 : i32
    %115 = tpu.assume_multiple %114, 8 : i32
    %116 = arith.index_cast %115 : i32 to index
    %c0_49 = arith.constant 0 : index
    %117 = vector.load %arg14[%116, %c0_49] : memref<64x128xf32, #tpu.memory_space<vmem>>, vector<8x128xf32>
    %cst_50 = arith.constant dense<0.000000e+00> : vector<8x128xf32>
    %118 = tpu.matmul %91, %0, %cst_50 {dimension_numbers = #tpu.dot_dimension_numbers<[1], [0], [0], [1], [0, 0, 1, 1], [], []>} : vector<8x32xf32>, vector<32x128xf32>, vector<8x128xf32> -> vector<8x128xf32>
    %119 = arith.addf %117, %118 : vector<8x128xf32>
    %120 = arith.negf %119 : vector<8x128xf32>
    %121 = math.exp %120 : vector<8x128xf32>
    %cst_51 = arith.constant 1.000000e+00 : f32
    %122 = vector.broadcast %cst_51 : f32 to vector<8x128xf32>
    %123 = arith.addf %122, %121 : vector<8x128xf32>
    %124 = arith.divf %122, %123 : vector<8x128xf32>
    %125 = vector.extract_strided_slice %124 {offsets = [0, 0], sizes = [8, 32], strides = [1, 1]} : vector<8x128xf32> to vector<8x32xf32>
    %126 = vector.extract_strided_slice %124 {offsets = [0, 32], sizes = [8, 32], strides = [1, 1]} : vector<8x128xf32> to vector<8x32xf32>
    %127 = vector.extract_strided_slice %124 {offsets = [0, 64], sizes = [8, 32], strides = [1, 1]} : vector<8x128xf32> to vector<8x32xf32>
    %cst_52 = arith.constant 2.000000e+00 : f32
    %128 = vector.broadcast %cst_52 : f32 to vector<8x32xf32>
    %129 = arith.mulf %128, %127 : vector<8x32xf32>
    %cst_53 = arith.constant 1.000000e+00 : f32
    %130 = vector.broadcast %cst_53 : f32 to vector<8x32xf32>
    %131 = arith.subf %129, %130 : vector<8x32xf32>
    %132 = vector.extract_strided_slice %124 {offsets = [0, 96], sizes = [8, 32], strides = [1, 1]} : vector<8x128xf32> to vector<8x32xf32>
    %133 = arith.mulf %126, %89 : vector<8x32xf32>
    %134 = arith.mulf %125, %131 : vector<8x32xf32>
    %135 = arith.addf %133, %134 : vector<8x32xf32>
    %136 = math.tanh %135 : vector<8x32xf32>
    %137 = arith.mulf %132, %136 : vector<8x32xf32>
    %cst_54 = arith.constant dense<0.000000e+00> : vector<8x128xf32>
    %138 = tpu.matmul %137, %1, %cst_54 {dimension_numbers = #tpu.dot_dimension_numbers<[1], [0], [0], [1], [0, 0, 1, 1], [], []>} : vector<8x32xf32>, vector<32x128xf32>, vector<8x128xf32> -> vector<8x128xf32>
    %139 = arith.addf %113, %138 : vector<8x128xf32>
    %140 = arith.addf %139, %12 : vector<8x128xf32>
    %141 = arith.negf %140 : vector<8x128xf32>
    %142 = math.exp %141 : vector<8x128xf32>
    %cst_55 = arith.constant 1.000000e+00 : f32
    %143 = vector.broadcast %cst_55 : f32 to vector<8x128xf32>
    %144 = arith.addf %143, %142 : vector<8x128xf32>
    %145 = arith.divf %143, %144 : vector<8x128xf32>
    %146 = vector.extract_strided_slice %145 {offsets = [0, 0], sizes = [8, 32], strides = [1, 1]} : vector<8x128xf32> to vector<8x32xf32>
    %147 = vector.extract_strided_slice %145 {offsets = [0, 32], sizes = [8, 32], strides = [1, 1]} : vector<8x128xf32> to vector<8x32xf32>
    %148 = vector.extract_strided_slice %145 {offsets = [0, 64], sizes = [8, 32], strides = [1, 1]} : vector<8x128xf32> to vector<8x32xf32>
    %cst_56 = arith.constant 2.000000e+00 : f32
    %149 = vector.broadcast %cst_56 : f32 to vector<8x32xf32>
    %150 = arith.mulf %149, %148 : vector<8x32xf32>
    %cst_57 = arith.constant 1.000000e+00 : f32
    %151 = vector.broadcast %cst_57 : f32 to vector<8x32xf32>
    %152 = arith.subf %150, %151 : vector<8x32xf32>
    %153 = vector.extract_strided_slice %145 {offsets = [0, 96], sizes = [8, 32], strides = [1, 1]} : vector<8x128xf32> to vector<8x32xf32>
    %154 = arith.mulf %147, %110 : vector<8x32xf32>
    %155 = arith.mulf %146, %152 : vector<8x32xf32>
    %156 = arith.addf %154, %155 : vector<8x32xf32>
    %157 = math.tanh %156 : vector<8x32xf32>
    %158 = arith.mulf %153, %157 : vector<8x32xf32>
    %c3_i32 = arith.constant 3 : i32
    %cst_58 = arith.constant dense<0.000000e+00> : vector<8x128xf32>
    %159 = tpu.matmul %158, %2, %cst_58 {dimension_numbers = #tpu.dot_dimension_numbers<[1], [0], [0], [1], [0, 0, 1, 1], [], []>} : vector<8x32xf32>, vector<32x128xf32>, vector<8x128xf32> -> vector<8x128xf32>
    %c8_i32_59 = arith.constant 8 : i32
    %160 = arith.muli %c3_i32, %c8_i32_59 : i32
    %161 = tpu.assume_multiple %160, 8 : i32
    %162 = arith.index_cast %161 : i32 to index
    %c0_60 = arith.constant 0 : index
    %163 = vector.load %arg14[%162, %c0_60] : memref<64x128xf32, #tpu.memory_space<vmem>>, vector<8x128xf32>
    %cst_61 = arith.constant dense<0.000000e+00> : vector<8x128xf32>
    %164 = tpu.matmul %137, %0, %cst_61 {dimension_numbers = #tpu.dot_dimension_numbers<[1], [0], [0], [1], [0, 0, 1, 1], [], []>} : vector<8x32xf32>, vector<32x128xf32>, vector<8x128xf32> -> vector<8x128xf32>
    %165 = arith.addf %163, %164 : vector<8x128xf32>
    %166 = arith.negf %165 : vector<8x128xf32>
    %167 = math.exp %166 : vector<8x128xf32>
    %cst_62 = arith.constant 1.000000e+00 : f32
    %168 = vector.broadcast %cst_62 : f32 to vector<8x128xf32>
    %169 = arith.addf %168, %167 : vector<8x128xf32>
    %170 = arith.divf %168, %169 : vector<8x128xf32>
    %171 = vector.extract_strided_slice %170 {offsets = [0, 0], sizes = [8, 32], strides = [1, 1]} : vector<8x128xf32> to vector<8x32xf32>
    %172 = vector.extract_strided_slice %170 {offsets = [0, 32], sizes = [8, 32], strides = [1, 1]} : vector<8x128xf32> to vector<8x32xf32>
    %173 = vector.extract_strided_slice %170 {offsets = [0, 64], sizes = [8, 32], strides = [1, 1]} : vector<8x128xf32> to vector<8x32xf32>
    %cst_63 = arith.constant 2.000000e+00 : f32
    %174 = vector.broadcast %cst_63 : f32 to vector<8x32xf32>
    %175 = arith.mulf %174, %173 : vector<8x32xf32>
    %cst_64 = arith.constant 1.000000e+00 : f32
    %176 = vector.broadcast %cst_64 : f32 to vector<8x32xf32>
    %177 = arith.subf %175, %176 : vector<8x32xf32>
    %178 = vector.extract_strided_slice %170 {offsets = [0, 96], sizes = [8, 32], strides = [1, 1]} : vector<8x128xf32> to vector<8x32xf32>
    %179 = arith.mulf %172, %135 : vector<8x32xf32>
    %180 = arith.mulf %171, %177 : vector<8x32xf32>
    %181 = arith.addf %179, %180 : vector<8x32xf32>
    %182 = math.tanh %181 : vector<8x32xf32>
    %183 = arith.mulf %178, %182 : vector<8x32xf32>
    %cst_65 = arith.constant dense<0.000000e+00> : vector<8x128xf32>
    %184 = tpu.matmul %183, %1, %cst_65 {dimension_numbers = #tpu.dot_dimension_numbers<[1], [0], [0], [1], [0, 0, 1, 1], [], []>} : vector<8x32xf32>, vector<32x128xf32>, vector<8x128xf32> -> vector<8x128xf32>
    %185 = arith.addf %159, %184 : vector<8x128xf32>
    %186 = arith.addf %185, %12 : vector<8x128xf32>
    %187 = arith.negf %186 : vector<8x128xf32>
    %188 = math.exp %187 : vector<8x128xf32>
    %cst_66 = arith.constant 1.000000e+00 : f32
    %189 = vector.broadcast %cst_66 : f32 to vector<8x128xf32>
    %190 = arith.addf %189, %188 : vector<8x128xf32>
    %191 = arith.divf %189, %190 : vector<8x128xf32>
    %192 = vector.extract_strided_slice %191 {offsets = [0, 0], sizes = [8, 32], strides = [1, 1]} : vector<8x128xf32> to vector<8x32xf32>
    %193 = vector.extract_strided_slice %191 {offsets = [0, 32], sizes = [8, 32], strides = [1, 1]} : vector<8x128xf32> to vector<8x32xf32>
    %194 = vector.extract_strided_slice %191 {offsets = [0, 64], sizes = [8, 32], strides = [1, 1]} : vector<8x128xf32> to vector<8x32xf32>
    %cst_67 = arith.constant 2.000000e+00 : f32
    %195 = vector.broadcast %cst_67 : f32 to vector<8x32xf32>
    %196 = arith.mulf %195, %194 : vector<8x32xf32>
    %cst_68 = arith.constant 1.000000e+00 : f32
    %197 = vector.broadcast %cst_68 : f32 to vector<8x32xf32>
    %198 = arith.subf %196, %197 : vector<8x32xf32>
    %199 = vector.extract_strided_slice %191 {offsets = [0, 96], sizes = [8, 32], strides = [1, 1]} : vector<8x128xf32> to vector<8x32xf32>
    %200 = arith.mulf %193, %156 : vector<8x32xf32>
    %201 = arith.mulf %192, %198 : vector<8x32xf32>
    %202 = arith.addf %200, %201 : vector<8x32xf32>
    %203 = math.tanh %202 : vector<8x32xf32>
    %204 = arith.mulf %199, %203 : vector<8x32xf32>
    %c4_i32 = arith.constant 4 : i32
    %cst_69 = arith.constant dense<0.000000e+00> : vector<8x128xf32>
    %205 = tpu.matmul %204, %2, %cst_69 {dimension_numbers = #tpu.dot_dimension_numbers<[1], [0], [0], [1], [0, 0, 1, 1], [], []>} : vector<8x32xf32>, vector<32x128xf32>, vector<8x128xf32> -> vector<8x128xf32>
    %c8_i32_70 = arith.constant 8 : i32
    %206 = arith.muli %c4_i32, %c8_i32_70 : i32
    %207 = tpu.assume_multiple %206, 8 : i32
    %208 = arith.index_cast %207 : i32 to index
    %c0_71 = arith.constant 0 : index
    %209 = vector.load %arg14[%208, %c0_71] : memref<64x128xf32, #tpu.memory_space<vmem>>, vector<8x128xf32>
    %cst_72 = arith.constant dense<0.000000e+00> : vector<8x128xf32>
    %210 = tpu.matmul %183, %0, %cst_72 {dimension_numbers = #tpu.dot_dimension_numbers<[1], [0], [0], [1], [0, 0, 1, 1], [], []>} : vector<8x32xf32>, vector<32x128xf32>, vector<8x128xf32> -> vector<8x128xf32>
    %211 = arith.addf %209, %210 : vector<8x128xf32>
    %212 = arith.negf %211 : vector<8x128xf32>
    %213 = math.exp %212 : vector<8x128xf32>
    %cst_73 = arith.constant 1.000000e+00 : f32
    %214 = vector.broadcast %cst_73 : f32 to vector<8x128xf32>
    %215 = arith.addf %214, %213 : vector<8x128xf32>
    %216 = arith.divf %214, %215 : vector<8x128xf32>
    %217 = vector.extract_strided_slice %216 {offsets = [0, 0], sizes = [8, 32], strides = [1, 1]} : vector<8x128xf32> to vector<8x32xf32>
    %218 = vector.extract_strided_slice %216 {offsets = [0, 32], sizes = [8, 32], strides = [1, 1]} : vector<8x128xf32> to vector<8x32xf32>
    %219 = vector.extract_strided_slice %216 {offsets = [0, 64], sizes = [8, 32], strides = [1, 1]} : vector<8x128xf32> to vector<8x32xf32>
    %cst_74 = arith.constant 2.000000e+00 : f32
    %220 = vector.broadcast %cst_74 : f32 to vector<8x32xf32>
    %221 = arith.mulf %220, %219 : vector<8x32xf32>
    %cst_75 = arith.constant 1.000000e+00 : f32
    %222 = vector.broadcast %cst_75 : f32 to vector<8x32xf32>
    %223 = arith.subf %221, %222 : vector<8x32xf32>
    %224 = vector.extract_strided_slice %216 {offsets = [0, 96], sizes = [8, 32], strides = [1, 1]} : vector<8x128xf32> to vector<8x32xf32>
    %225 = arith.mulf %218, %181 : vector<8x32xf32>
    %226 = arith.mulf %217, %223 : vector<8x32xf32>
    %227 = arith.addf %225, %226 : vector<8x32xf32>
    %228 = math.tanh %227 : vector<8x32xf32>
    %229 = arith.mulf %224, %228 : vector<8x32xf32>
    %cst_76 = arith.constant dense<0.000000e+00> : vector<8x128xf32>
    %230 = tpu.matmul %229, %1, %cst_76 {dimension_numbers = #tpu.dot_dimension_numbers<[1], [0], [0], [1], [0, 0, 1, 1], [], []>} : vector<8x32xf32>, vector<32x128xf32>, vector<8x128xf32> -> vector<8x128xf32>
    %231 = arith.addf %205, %230 : vector<8x128xf32>
    %232 = arith.addf %231, %12 : vector<8x128xf32>
    %233 = arith.negf %232 : vector<8x128xf32>
    %234 = math.exp %233 : vector<8x128xf32>
    %cst_77 = arith.constant 1.000000e+00 : f32
    %235 = vector.broadcast %cst_77 : f32 to vector<8x128xf32>
    %236 = arith.addf %235, %234 : vector<8x128xf32>
    %237 = arith.divf %235, %236 : vector<8x128xf32>
    %238 = vector.extract_strided_slice %237 {offsets = [0, 0], sizes = [8, 32], strides = [1, 1]} : vector<8x128xf32> to vector<8x32xf32>
    %239 = vector.extract_strided_slice %237 {offsets = [0, 32], sizes = [8, 32], strides = [1, 1]} : vector<8x128xf32> to vector<8x32xf32>
    %240 = vector.extract_strided_slice %237 {offsets = [0, 64], sizes = [8, 32], strides = [1, 1]} : vector<8x128xf32> to vector<8x32xf32>
    %cst_78 = arith.constant 2.000000e+00 : f32
    %241 = vector.broadcast %cst_78 : f32 to vector<8x32xf32>
    %242 = arith.mulf %241, %240 : vector<8x32xf32>
    %cst_79 = arith.constant 1.000000e+00 : f32
    %243 = vector.broadcast %cst_79 : f32 to vector<8x32xf32>
    %244 = arith.subf %242, %243 : vector<8x32xf32>
    %245 = vector.extract_strided_slice %237 {offsets = [0, 96], sizes = [8, 32], strides = [1, 1]} : vector<8x128xf32> to vector<8x32xf32>
    %246 = arith.mulf %239, %202 : vector<8x32xf32>
    %247 = arith.mulf %238, %244 : vector<8x32xf32>
    %248 = arith.addf %246, %247 : vector<8x32xf32>
    %249 = math.tanh %248 : vector<8x32xf32>
    %250 = arith.mulf %245, %249 : vector<8x32xf32>
    %c5_i32 = arith.constant 5 : i32
    %cst_80 = arith.constant dense<0.000000e+00> : vector<8x128xf32>
    %251 = tpu.matmul %250, %2, %cst_80 {dimension_numbers = #tpu.dot_dimension_numbers<[1], [0], [0], [1], [0, 0, 1, 1], [], []>} : vector<8x32xf32>, vector<32x128xf32>, vector<8x128xf32> -> vector<8x128xf32>
    %c8_i32_81 = arith.constant 8 : i32
    %252 = arith.muli %c5_i32, %c8_i32_81 : i32
    %253 = tpu.assume_multiple %252, 8 : i32
    %254 = arith.index_cast %253 : i32 to index
    %c0_82 = arith.constant 0 : index
    %255 = vector.load %arg14[%254, %c0_82] : memref<64x128xf32, #tpu.memory_space<vmem>>, vector<8x128xf32>
    %cst_83 = arith.constant dense<0.000000e+00> : vector<8x128xf32>
    %256 = tpu.matmul %229, %0, %cst_83 {dimension_numbers = #tpu.dot_dimension_numbers<[1], [0], [0], [1], [0, 0, 1, 1], [], []>} : vector<8x32xf32>, vector<32x128xf32>, vector<8x128xf32> -> vector<8x128xf32>
    %257 = arith.addf %255, %256 : vector<8x128xf32>
    %258 = arith.negf %257 : vector<8x128xf32>
    %259 = math.exp %258 : vector<8x128xf32>
    %cst_84 = arith.constant 1.000000e+00 : f32
    %260 = vector.broadcast %cst_84 : f32 to vector<8x128xf32>
    %261 = arith.addf %260, %259 : vector<8x128xf32>
    %262 = arith.divf %260, %261 : vector<8x128xf32>
    %263 = vector.extract_strided_slice %262 {offsets = [0, 0], sizes = [8, 32], strides = [1, 1]} : vector<8x128xf32> to vector<8x32xf32>
    %264 = vector.extract_strided_slice %262 {offsets = [0, 32], sizes = [8, 32], strides = [1, 1]} : vector<8x128xf32> to vector<8x32xf32>
    %265 = vector.extract_strided_slice %262 {offsets = [0, 64], sizes = [8, 32], strides = [1, 1]} : vector<8x128xf32> to vector<8x32xf32>
    %cst_85 = arith.constant 2.000000e+00 : f32
    %266 = vector.broadcast %cst_85 : f32 to vector<8x32xf32>
    %267 = arith.mulf %266, %265 : vector<8x32xf32>
    %cst_86 = arith.constant 1.000000e+00 : f32
    %268 = vector.broadcast %cst_86 : f32 to vector<8x32xf32>
    %269 = arith.subf %267, %268 : vector<8x32xf32>
    %270 = vector.extract_strided_slice %262 {offsets = [0, 96], sizes = [8, 32], strides = [1, 1]} : vector<8x128xf32> to vector<8x32xf32>
    %271 = arith.mulf %264, %227 : vector<8x32xf32>
    %272 = arith.mulf %263, %269 : vector<8x32xf32>
    %273 = arith.addf %271, %272 : vector<8x32xf32>
    %274 = math.tanh %273 : vector<8x32xf32>
    %275 = arith.mulf %270, %274 : vector<8x32xf32>
    %cst_87 = arith.constant dense<0.000000e+00> : vector<8x128xf32>
    %276 = tpu.matmul %275, %1, %cst_87 {dimension_numbers = #tpu.dot_dimension_numbers<[1], [0], [0], [1], [0, 0, 1, 1], [], []>} : vector<8x32xf32>, vector<32x128xf32>, vector<8x128xf32> -> vector<8x128xf32>
    %277 = arith.addf %251, %276 : vector<8x128xf32>
    %278 = arith.addf %277, %12 : vector<8x128xf32>
    %279 = arith.negf %278 : vector<8x128xf32>
    %280 = math.exp %279 : vector<8x128xf32>
    %cst_88 = arith.constant 1.000000e+00 : f32
    %281 = vector.broadcast %cst_88 : f32 to vector<8x128xf32>
    %282 = arith.addf %281, %280 : vector<8x128xf32>
    %283 = arith.divf %281, %282 : vector<8x128xf32>
    %284 = vector.extract_strided_slice %283 {offsets = [0, 0], sizes = [8, 32], strides = [1, 1]} : vector<8x128xf32> to vector<8x32xf32>
    %285 = vector.extract_strided_slice %283 {offsets = [0, 32], sizes = [8, 32], strides = [1, 1]} : vector<8x128xf32> to vector<8x32xf32>
    %286 = vector.extract_strided_slice %283 {offsets = [0, 64], sizes = [8, 32], strides = [1, 1]} : vector<8x128xf32> to vector<8x32xf32>
    %cst_89 = arith.constant 2.000000e+00 : f32
    %287 = vector.broadcast %cst_89 : f32 to vector<8x32xf32>
    %288 = arith.mulf %287, %286 : vector<8x32xf32>
    %cst_90 = arith.constant 1.000000e+00 : f32
    %289 = vector.broadcast %cst_90 : f32 to vector<8x32xf32>
    %290 = arith.subf %288, %289 : vector<8x32xf32>
    %291 = vector.extract_strided_slice %283 {offsets = [0, 96], sizes = [8, 32], strides = [1, 1]} : vector<8x128xf32> to vector<8x32xf32>
    %292 = arith.mulf %285, %248 : vector<8x32xf32>
    %293 = arith.mulf %284, %290 : vector<8x32xf32>
    %294 = arith.addf %292, %293 : vector<8x32xf32>
    %295 = math.tanh %294 : vector<8x32xf32>
    %296 = arith.mulf %291, %295 : vector<8x32xf32>
    %c6_i32 = arith.constant 6 : i32
    %cst_91 = arith.constant dense<0.000000e+00> : vector<8x128xf32>
    %297 = tpu.matmul %296, %2, %cst_91 {dimension_numbers = #tpu.dot_dimension_numbers<[1], [0], [0], [1], [0, 0, 1, 1], [], []>} : vector<8x32xf32>, vector<32x128xf32>, vector<8x128xf32> -> vector<8x128xf32>
    %c8_i32_92 = arith.constant 8 : i32
    %298 = arith.muli %c6_i32, %c8_i32_92 : i32
    %299 = tpu.assume_multiple %298, 8 : i32
    %300 = arith.index_cast %299 : i32 to index
    %c0_93 = arith.constant 0 : index
    %301 = vector.load %arg14[%300, %c0_93] : memref<64x128xf32, #tpu.memory_space<vmem>>, vector<8x128xf32>
    %cst_94 = arith.constant dense<0.000000e+00> : vector<8x128xf32>
    %302 = tpu.matmul %275, %0, %cst_94 {dimension_numbers = #tpu.dot_dimension_numbers<[1], [0], [0], [1], [0, 0, 1, 1], [], []>} : vector<8x32xf32>, vector<32x128xf32>, vector<8x128xf32> -> vector<8x128xf32>
    %303 = arith.addf %301, %302 : vector<8x128xf32>
    %304 = arith.negf %303 : vector<8x128xf32>
    %305 = math.exp %304 : vector<8x128xf32>
    %cst_95 = arith.constant 1.000000e+00 : f32
    %306 = vector.broadcast %cst_95 : f32 to vector<8x128xf32>
    %307 = arith.addf %306, %305 : vector<8x128xf32>
    %308 = arith.divf %306, %307 : vector<8x128xf32>
    %309 = vector.extract_strided_slice %308 {offsets = [0, 0], sizes = [8, 32], strides = [1, 1]} : vector<8x128xf32> to vector<8x32xf32>
    %310 = vector.extract_strided_slice %308 {offsets = [0, 32], sizes = [8, 32], strides = [1, 1]} : vector<8x128xf32> to vector<8x32xf32>
    %311 = vector.extract_strided_slice %308 {offsets = [0, 64], sizes = [8, 32], strides = [1, 1]} : vector<8x128xf32> to vector<8x32xf32>
    %cst_96 = arith.constant 2.000000e+00 : f32
    %312 = vector.broadcast %cst_96 : f32 to vector<8x32xf32>
    %313 = arith.mulf %312, %311 : vector<8x32xf32>
    %cst_97 = arith.constant 1.000000e+00 : f32
    %314 = vector.broadcast %cst_97 : f32 to vector<8x32xf32>
    %315 = arith.subf %313, %314 : vector<8x32xf32>
    %316 = vector.extract_strided_slice %308 {offsets = [0, 96], sizes = [8, 32], strides = [1, 1]} : vector<8x128xf32> to vector<8x32xf32>
    %317 = arith.mulf %310, %273 : vector<8x32xf32>
    %318 = arith.mulf %309, %315 : vector<8x32xf32>
    %319 = arith.addf %317, %318 : vector<8x32xf32>
    %320 = math.tanh %319 : vector<8x32xf32>
    %321 = arith.mulf %316, %320 : vector<8x32xf32>
    %cst_98 = arith.constant dense<0.000000e+00> : vector<8x128xf32>
    %322 = tpu.matmul %321, %1, %cst_98 {dimension_numbers = #tpu.dot_dimension_numbers<[1], [0], [0], [1], [0, 0, 1, 1], [], []>} : vector<8x32xf32>, vector<32x128xf32>, vector<8x128xf32> -> vector<8x128xf32>
    %323 = arith.addf %297, %322 : vector<8x128xf32>
    %324 = arith.addf %323, %12 : vector<8x128xf32>
    %325 = arith.negf %324 : vector<8x128xf32>
    %326 = math.exp %325 : vector<8x128xf32>
    %cst_99 = arith.constant 1.000000e+00 : f32
    %327 = vector.broadcast %cst_99 : f32 to vector<8x128xf32>
    %328 = arith.addf %327, %326 : vector<8x128xf32>
    %329 = arith.divf %327, %328 : vector<8x128xf32>
    %330 = vector.extract_strided_slice %329 {offsets = [0, 0], sizes = [8, 32], strides = [1, 1]} : vector<8x128xf32> to vector<8x32xf32>
    %331 = vector.extract_strided_slice %329 {offsets = [0, 32], sizes = [8, 32], strides = [1, 1]} : vector<8x128xf32> to vector<8x32xf32>
    %332 = vector.extract_strided_slice %329 {offsets = [0, 64], sizes = [8, 32], strides = [1, 1]} : vector<8x128xf32> to vector<8x32xf32>
    %cst_100 = arith.constant 2.000000e+00 : f32
    %333 = vector.broadcast %cst_100 : f32 to vector<8x32xf32>
    %334 = arith.mulf %333, %332 : vector<8x32xf32>
    %cst_101 = arith.constant 1.000000e+00 : f32
    %335 = vector.broadcast %cst_101 : f32 to vector<8x32xf32>
    %336 = arith.subf %334, %335 : vector<8x32xf32>
    %337 = vector.extract_strided_slice %329 {offsets = [0, 96], sizes = [8, 32], strides = [1, 1]} : vector<8x128xf32> to vector<8x32xf32>
    %338 = arith.mulf %331, %294 : vector<8x32xf32>
    %339 = arith.mulf %330, %336 : vector<8x32xf32>
    %340 = arith.addf %338, %339 : vector<8x32xf32>
    %341 = math.tanh %340 : vector<8x32xf32>
    %342 = arith.mulf %337, %341 : vector<8x32xf32>
    %c7_i32 = arith.constant 7 : i32
    %cst_102 = arith.constant dense<0.000000e+00> : vector<8x128xf32>
    %343 = tpu.matmul %342, %2, %cst_102 {dimension_numbers = #tpu.dot_dimension_numbers<[1], [0], [0], [1], [0, 0, 1, 1], [], []>} : vector<8x32xf32>, vector<32x128xf32>, vector<8x128xf32> -> vector<8x128xf32>
    %c8_i32_103 = arith.constant 8 : i32
    %344 = arith.muli %c7_i32, %c8_i32_103 : i32
    %345 = tpu.assume_multiple %344, 8 : i32
    %346 = arith.index_cast %345 : i32 to index
    %c0_104 = arith.constant 0 : index
    %347 = vector.load %arg14[%346, %c0_104] : memref<64x128xf32, #tpu.memory_space<vmem>>, vector<8x128xf32>
    %cst_105 = arith.constant dense<0.000000e+00> : vector<8x128xf32>
    %348 = tpu.matmul %321, %0, %cst_105 {dimension_numbers = #tpu.dot_dimension_numbers<[1], [0], [0], [1], [0, 0, 1, 1], [], []>} : vector<8x32xf32>, vector<32x128xf32>, vector<8x128xf32> -> vector<8x128xf32>
    %349 = arith.addf %347, %348 : vector<8x128xf32>
    %350 = arith.negf %349 : vector<8x128xf32>
    %351 = math.exp %350 : vector<8x128xf32>
    %cst_106 = arith.constant 1.000000e+00 : f32
    %352 = vector.broadcast %cst_106 : f32 to vector<8x128xf32>
    %353 = arith.addf %352, %351 : vector<8x128xf32>
    %354 = arith.divf %352, %353 : vector<8x128xf32>
    %355 = vector.extract_strided_slice %354 {offsets = [0, 0], sizes = [8, 32], strides = [1, 1]} : vector<8x128xf32> to vector<8x32xf32>
    %356 = vector.extract_strided_slice %354 {offsets = [0, 32], sizes = [8, 32], strides = [1, 1]} : vector<8x128xf32> to vector<8x32xf32>
    %357 = vector.extract_strided_slice %354 {offsets = [0, 64], sizes = [8, 32], strides = [1, 1]} : vector<8x128xf32> to vector<8x32xf32>
    %cst_107 = arith.constant 2.000000e+00 : f32
    %358 = vector.broadcast %cst_107 : f32 to vector<8x32xf32>
    %359 = arith.mulf %358, %357 : vector<8x32xf32>
    %cst_108 = arith.constant 1.000000e+00 : f32
    %360 = vector.broadcast %cst_108 : f32 to vector<8x32xf32>
    %361 = arith.subf %359, %360 : vector<8x32xf32>
    %362 = vector.extract_strided_slice %354 {offsets = [0, 96], sizes = [8, 32], strides = [1, 1]} : vector<8x128xf32> to vector<8x32xf32>
    %363 = arith.mulf %356, %319 : vector<8x32xf32>
    %364 = arith.mulf %355, %361 : vector<8x32xf32>
    %365 = arith.addf %363, %364 : vector<8x32xf32>
    %366 = math.tanh %365 : vector<8x32xf32>
    %367 = arith.mulf %362, %366 : vector<8x32xf32>
    %cst_109 = arith.constant dense<0.000000e+00> : vector<8x128xf32>
    %368 = tpu.matmul %367, %1, %cst_109 {dimension_numbers = #tpu.dot_dimension_numbers<[1], [0], [0], [1], [0, 0, 1, 1], [], []>} : vector<8x32xf32>, vector<32x128xf32>, vector<8x128xf32> -> vector<8x128xf32>
    %369 = arith.addf %343, %368 : vector<8x128xf32>
    %370 = arith.addf %369, %12 : vector<8x128xf32>
    %371 = arith.negf %370 : vector<8x128xf32>
    %372 = math.exp %371 : vector<8x128xf32>
    %cst_110 = arith.constant 1.000000e+00 : f32
    %373 = vector.broadcast %cst_110 : f32 to vector<8x128xf32>
    %374 = arith.addf %373, %372 : vector<8x128xf32>
    %375 = arith.divf %373, %374 : vector<8x128xf32>
    %376 = vector.extract_strided_slice %375 {offsets = [0, 0], sizes = [8, 32], strides = [1, 1]} : vector<8x128xf32> to vector<8x32xf32>
    %377 = vector.extract_strided_slice %375 {offsets = [0, 32], sizes = [8, 32], strides = [1, 1]} : vector<8x128xf32> to vector<8x32xf32>
    %378 = vector.extract_strided_slice %375 {offsets = [0, 64], sizes = [8, 32], strides = [1, 1]} : vector<8x128xf32> to vector<8x32xf32>
    %cst_111 = arith.constant 2.000000e+00 : f32
    %379 = vector.broadcast %cst_111 : f32 to vector<8x32xf32>
    %380 = arith.mulf %379, %378 : vector<8x32xf32>
    %cst_112 = arith.constant 1.000000e+00 : f32
    %381 = vector.broadcast %cst_112 : f32 to vector<8x32xf32>
    %382 = arith.subf %380, %381 : vector<8x32xf32>
    %383 = vector.extract_strided_slice %375 {offsets = [0, 96], sizes = [8, 32], strides = [1, 1]} : vector<8x128xf32> to vector<8x32xf32>
    %384 = arith.mulf %377, %340 : vector<8x32xf32>
    %385 = arith.mulf %376, %382 : vector<8x32xf32>
    %386 = arith.addf %384, %385 : vector<8x32xf32>
    %387 = math.tanh %386 : vector<8x32xf32>
    %388 = arith.mulf %383, %387 : vector<8x32xf32>
    %c8_i32_113 = arith.constant 8 : i32
    %c0_114 = arith.constant 0 : index
    %c0_115 = arith.constant 0 : index
    %389 = vector.load %arg9[%c0_114, %c0_115] : memref<32x64xf32, #tpu.memory_space<vmem>>, vector<32x64xf32>
    %cst_116 = arith.constant dense<0.000000e+00> : vector<8x64xf32>
    %390 = tpu.matmul %388, %389, %cst_116 {dimension_numbers = #tpu.dot_dimension_numbers<[1], [0], [0], [1], [0, 0, 1, 1], [], []>} : vector<8x32xf32>, vector<32x64xf32>, vector<8x64xf32> -> vector<8x64xf32>
    %c0_117 = arith.constant 0 : index
    %c0_118 = arith.constant 0 : index
    %391 = vector.load %arg10[%c0_117, %c0_118] : memref<1x64xf32, #tpu.memory_space<vmem>>, vector<1x64xf32>
    %392 = vector.broadcast %391 : vector<1x64xf32> to vector<8x64xf32>
    %393 = arith.addf %390, %392 : vector<8x64xf32>
    %cst_119 = arith.constant 0.000000e+00 : f32
    %394 = vector.broadcast %cst_119 : f32 to vector<8x64xf32>
    %395 = arith.maximumf %393, %394 : vector<8x64xf32>
    %c0_120 = arith.constant 0 : index
    %c0_121 = arith.constant 0 : index
    %396 = vector.load %arg11[%c0_120, %c0_121] : memref<1x64xf32, #tpu.memory_space<vmem>>, vector<1x64xf32>
    %397 = vector.broadcast %396 : vector<1x64xf32> to vector<8x64xf32>
    %398 = arith.mulf %395, %397 : vector<8x64xf32>
    %cst_122 = arith.constant dense<0.000000e+00> : vector<8xf32>
    %399 = vector.multi_reduction <add>, %398, %cst_122 [1] : vector<8x64xf32> to vector<8xf32>
    %400 = vector.shape_cast %399 : vector<8xf32> to vector<8x1xf32>
    %c0_123 = arith.constant 0 : index
    %c0_124 = arith.constant 0 : index
    %401 = vector.load %arg12[%c0_123, %c0_124] : memref<1x1xf32, #tpu.memory_space<vmem>>, vector<1x1xf32>
    %402 = vector.broadcast %401 : vector<1x1xf32> to vector<8x1xf32>
    %403 = arith.addf %400, %402 : vector<8x1xf32>
    %c0_125 = arith.constant 0 : index
    %c0_126 = arith.constant 0 : index
    %404 = vector.load %arg13[%c0_125, %c0_126] : memref<8x1xf32, #tpu.memory_space<vmem>>, vector<8x1xf32>
    tpu.vector_store %arg13[%c0_125, %c0_126], %403 {strides = array<i32>} : memref<8x1xf32, #tpu.memory_space<vmem>>, vector<8x1xf32>,
    return
  }
}

</mosaic_0001>

<bundles_post_ra>
// kernel: last_decoder_forward.1
= control target key start
LH: loop header
LB: loop body
LE: loop exit
PB: predicated region body
PF: predicated region fallthrough
CT: control target
= control target key end

     0   :  { %s3893_s0 = inlined_call_operand.vmem [shape: f32[64,32], index: 0, kind: input, shape index: {}]   ;;  %s3894_s1 = inlined_call_operand.vmem [shape: f32[2,8,32], index: 1, kind: input, shape index: {}]   ;;  %s3895_s2 = inlined_call_operand.vmem [shape: f32[2,8,32], index: 2, kind: input, shape index: {}]   ;;  %s3896_s3 = inlined_call_operand.vmem [shape: f32[32,128], index: 3, kind: input, shape index: {}]   ;;  %s3897_s4 = inlined_call_operand.vmem [shape: f32[32,128], index: 4, kind: input, shape index: {}]   ;;  %s3898_s5 = inlined_call_operand.vmem [shape: f32[1,128], index: 5, kind: input, shape index: {}]   ;;  %s3899_s6 = inlined_call_operand.vmem [shape: f32[32,128], index: 6, kind: input, shape index: {}]   ;;  %s3900_s7 = inlined_call_operand.vmem [shape: f32[32,128], index: 7, kind: input, shape index: {}]   ;;  %s3901_s8 = inlined_call_operand.vmem [shape: f32[1,128], index: 8, kind: input, shape index: {}]   ;;  %s3902_s9 = inlined_call_operand.hbm [shape: f32[32,64], index: 9, kind: input, shape index: {}]   ;;  %s3903_s10 = inlined_call_operand.vmem [shape: f32[1,64], index: 10, kind: input, shape index: {}]   ;;  %s3904_s11 = inlined_call_operand.vmem [shape: f32[1,64], index: 11, kind: input, shape index: {}]   ;;  %s3905_s12 = inlined_call_operand.<no memory space> [shape: f32[1,1], index: 12, kind: input, shape index: {}]   ;;  %s3906_s13 = inlined_call_operand.vmem [shape: f32[8,1], index: 13, kind: output, shape index: {}]  }
   0x1   :  { %v18_v0 = vstv %s3905_s12 }
   0x2   :  { %19 = vst [vmem:[#allocation3] sm:$0x1] %v18_v0 }
   0x3   :  { %20 = vsyncpa [#allocation5], 0  ;;  %s3347_s27 = smov [#allocation4]   ;;  %s3323_s14 = scalar_lea.hbm %s3902_s9, 512 }
   0x4   :  { %s44_s28 = sshll.u32 %s3347_s27, 4  ;;  %p3324_p0 = scmp.ne.s32.totalorder %s3902_s9, %s3323_s14  ;;  %s45_s28 = int_to_ptr.vmem [resolvable:$true] %s44_s28 }
   0x5   :  { %p3327_p1 = scmp.lt.u32.totalorder %s3323_s14, %s3902_s9 }
   0x7   :  { %p3329_p2 = pnand %p3327_p1, %p3324_p0 }
   0x9   :  { %3332 = shalt.err (!%p3329_p2)
}
   0xa   :  { %s3333_s12 = scalar_lea.vmem %s45_s28, 512  ;;  %p3338_p4 = scmp.lt.s32.totalorder %s45_s28, %s45_s28 }
   0xb   :  { %p3334_p3 = scmp.ne.s32.totalorder %s45_s28, %s3333_s12  ;;  %p3339_p5 = scmp.lt.s32.totalorder %s3333_s12, %s3333_s12 }
   0xd   :  { %p3340_p6 = por %p3339_p5, %p3338_p4 }
   0xf   :  { %p3341_p7 = pnand %p3340_p6, %p3334_p3 }
  0x11   :  { %3344 = shalt.err (!%p3341_p7)
}
  0x12   :  { %s3348_s19 = smov 128   ;;  %s3349_s20 = smov 8  }
  0x13   :  { %50 = dma.hbm_to_vmem [thread:$0]  %s3902_s9, 512, %s45_s28, [#allocation5], %s3348_s19, %s3348_s19, %s3349_s20  }
  0x14   :  { %3345 = dma.done.wait [#allocation5], 512  }
  0x15   :  { %3346 = vsyncadd [#allocation5], 4294966784  ;;  %v3350_v1 = vmov 0.0|0.0   ;;  %vm3351_vm0 = vmmov 0   ;;  %v3352_v2 = vmov 0.0   ;;  %v80_v3 = vld [vmem:[%s3896_s3] sm:$0xff] }
  0x16   :  { %3068 = vmatprep.subr.bf16.mxu1 %v3350_v1  ;;  %2793 = vmatprep.mubr.msk.f32.mxu1 %vm3351_vm0, %v3352_v2  ;;  %v81_v4 = vld [vmem:[%s3896_s3 + $0x8] sm:$0xff]  ;;  %v60_v5 = vld [vmem:[%s3897_s4] sm:$0xff]  ;;  %vm91_vm1 = vcmask 261120   ;;  %v82_v8 = vld [vmem:[%s3896_s3 + $0x10] sm:$0xff]  ;;  %s3353_s26 = smov 64   ;;  %s3354_s28 = smov 32  }
  0x17   :  { %v3060_v6 = vpack.c.bf16 %v81_v4, %v80_v3  ;;  %v61_v7 = vld [vmem:[%s3897_s4 + $0x8] sm:$0xff]  ;;  %v83_v9 = vld [vmem:[%s3896_s3 + $0x18] sm:$0xff]  ;;  %v72_v12 = vld [vmem:[%s3893_s0] sm:$0xff]  ;;  %vm2537_vm2 = vcmask 523264   ;;  %vm2549_vm3 = vcmask 7168  }
  0x18   :  { %v3461_v10 = vpack.c.bf16 %v61_v7, %v60_v5  ;;  %v3064_v11 = vpack.c.bf16 %v83_v9, %v82_v8  ;;  %v62_v13 = vld [vmem:[%s3897_s4 + $0x10] sm:$0xff]  ;;  %v63_v14 = vld [vmem:[%s3897_s4 + $0x18] sm:$0xff]  ;;  %2773 = vmatprep.mubr.msk.f32.mxu0 %vm91_vm1, %v72_v12  ;;  %v73_v16 = vld [vmem:[%s3893_s0 + $0x8] sm:$0xff] }
  0x19   :  { %3061 = vmatprep.subr.bf16.mxu0 %v3060_v6  ;;  %v3474_v15 = vpack.c.bf16 %v63_v14, %v62_v13  ;;  %v236_v17 = vld [vmem:[%s3894_s1] sm:$0xff]  ;;  %v74_v38 = vld [vmem:[%s3893_s0 + $0x10] sm:$0xff]  ;;  %v75_v39 = vld [vmem:[%s3893_s0 + $0x18] sm:$0xff] }
  0x1a   :  { %3063 = vmatpush3.bf16.msra.mxu0 %v3060_v6  ;;  %3070 = vmatpush3.bf16.msra.mxu1 %v3461_v10  ;;  %v3493_v18 = vld [vmem:[%s3898_s5] ss:$0 sm:$0xff]  ;;  %v65_v42 = vld [vmem:[%s3899_s6 + $0x8] sm:$0xff]  ;;  %v66_v48 = vld [vmem:[%s3899_s6 + $0x10] sm:$0xff] }
  0x1b   :  { %3065 = vmatprep.subr.bf16.mxu0 %v3064_v11  ;;  %3071 = vmatprep.subr.bf16.mxu1 %v3350_v1  ;;  %v237_v31 = vld [vmem:[%s3895_s2] sm:$0xff]  ;;  %v69_v45 = vld [vmem:[%s3900_s7 + $0x8] sm:$0xff]  ;;  %v67_v49 = vld [vmem:[%s3899_s6 + $0x18] sm:$0xff] }
  0x1c   :  { %v76_v40 = vld [vmem:[%s3893_s0 + $0x20] sm:$0xff]  ;;  %v77_v46 = vld [vmem:[%s3893_s0 + $0x28] sm:$0xff]  ;;  %v78_v50 = vld [vmem:[%s3893_s0 + $0x30] sm:$0xff]  ;;  %v3548_v51 = vpack.c.bf16 %v67_v49, %v66_v48 }
  0x1d   :  { %v64_v41 = vld [vmem:[%s3899_s6] sm:$0xff]  ;;  %v70_v52 = vld [vmem:[%s3900_s7 + $0x10] sm:$0xff]  ;;  %v71_v53 = vld [vmem:[%s3900_s7 + $0x18] sm:$0xff] }
  0x1e   :  { %3067 = vmatpush3.bf16.msra.mxu0 %v3064_v11  ;;  %3073 = vmatpush3.bf16.msra.mxu1 %v3474_v15  ;;  %v3524_v43 = vpack.c.bf16 %v65_v42, %v64_v41  ;;  %v68_v44 = vld [vmem:[%s3900_s7] sm:$0xff]  ;;  %v3558_v54 = vpack.c.bf16 %v71_v53, %v70_v52  ;;  %v79_v55 = vld [vmem:[%s3893_s0 + $0x38] sm:$0xff]  ;;  %v2566_v57 = vld [vmem:[%s3894_s1 + $0x8] sm:$0xff] }
  0x1f   :  { %3074 = vmatprep.subr.bf16.mxu1 %v3350_v1  ;;  %3080 = vmatprep.subr.bf16.mxu0 %v3350_v1  ;;  %v3536_v47 = vpack.c.bf16 %v69_v45, %v68_v44  ;;  %v3614_v8 = vld [vmem:[%s3901_s8] ss:$0 sm:$0xff] }
  0x21   :  { %2774 = vmatmul.mubr.msk.f32.vlgmr.msra.gmra.mrb[0].mxu0 %vm91_vm1, %v73_v16  ;;  %2794 = vmatmul.mubr.msk.f32.vlgmr.msra.gmra.mrb[0].mxu1 %vm91_vm1, %v236_v17 }
  0x22   :  { %2804 = vmatprep.mubr.msk.f32.mxu1 %vm3351_vm0, %v3352_v2  ;;  %2776 = vmatprep.mubr.msk.f32.mxu0 %vm91_vm1, %v74_v38 }
  0x23   :  { %3076 = vmatpush3.bf16.msra.mxu1 %v3524_v43  ;;  %3082 = vmatpush3.bf16.msra.mxu0 %v3536_v47 }
  0x24   :  { %3077 = vmatprep.subr.bf16.mxu1 %v3350_v1  ;;  %3083 = vmatprep.subr.bf16.mxu0 %v3350_v1 }
  0x25   :  { %2777 = vmatmul.mubr.msk.f32.gmra.mrb[2].mxu0 %vm91_vm1, %v75_v39 }
  0x26   :  { %2779 = vmatprep.mubr.msk.f32.mxu0 %vm91_vm1, %v76_v40 }
  0x27   :  { %3079 = vmatpush3.bf16.msra.mxu1 %v3548_v51  ;;  %3085 = vmatpush3.bf16.msra.mxu0 %v3558_v54 }
  0x28   :  { %3086 = vmatprep.subr.bf16.mxu1 %v3350_v1  ;;  %3092 = vmatprep.subr.bf16.mxu0 %v3350_v1 }
  0x29   :  { %2780 = vmatmul.mubr.msk.f32.gmra.mrb[4].mxu0 %vm91_vm1, %v77_v46 }
  0x2a   :  { %2782 = vmatprep.mubr.msk.f32.mxu0 %vm91_vm1, %v78_v50 }
  0x2d   :  { %2783 = vmatmul.mubr.msk.f32.gmra.mrb[6].mxu0 %vm91_vm1, %v79_v55 }
  0x2e   :  { %2815 = vmatprep.mubr.msk.f32.mxu0 %vm3351_vm0, %v3352_v2 }
  0x31   :  { %2816 = vmatmul.mubr.msk.f32.vlgmr.msra.gmra.mrb[8].mxu0 %vm91_vm1, %v2566_v57 }
  0x32   :  { %3094 = vmatpush3.bf16.msra.mxu0 %v3524_v43  ;;  %2837 = vmatprep.mubr.msk.f32.mxu0 %vm3351_vm0, %v3352_v2 }
  0x33   :  { %3095 = vmatprep.subr.bf16.mxu0 %v3350_v1 }
  0x36   :  { %3097 = vmatpush3.bf16.msra.mxu0 %v3548_v51 }
  0x37   :  { %3104 = vmatprep.subr.bf16.mxu0 %v3350_v1 }
  0xf4   :  { %v3495_v19 = vpop.f32.mrb[0].mxu0  ;;  %v312_v20 = vpop.f32.mrb[0].mxu1 }
  0xf5   :  { %v182_v21 = vpop.f32.mrb[1].mxu0  ;;  %v2795_v22 = vpop.f32.mrb[1].mxu1  ;;  %v188_v14 = vadd.f32 %v3495_v19, %v3493_v18  ;;  %v2567_v19 = vld [vmem:[%s3895_s2 + $0x8] sm:$0xff] }
  0xf6   :  { %v183_v23 = vadd.f32 %v3493_v18, %v182_v21 }
  0xf8   :  { %v316_v24 = vadd.f32 %v312_v20, %v183_v23  ;;  %v3585_v60 = vpop.f32.mrb[2].mxu0 }
  0xf9   :  { %v3587_v61 = vpop.f32.mrb[3].mxu0 }
  0xfa   :  { %v2569_v25 = vmul.f32 -1.442695, %v316_v24 }
  0xfc   :  { %3226 = vpow2.f32 %v2569_v25  ;;  %v3589_v62 = vpop.f32.mrb[4].mxu0 }
  0xfd   :  { %v3591_v63 = vpop.f32.mrb[5].mxu0 }
 0x100   :  { %v3593_v0 = vpop.f32.mrb[6].mxu0 }
 0x101   :  { %v3595_v3 = vpop.f32.mrb[7].mxu0 }
 0x104   :  { %v490_v5 = vpop.f32.mrb[8].mxu0 }
 0x105   :  { %v2817_v6 = vpop.f32.mrb[9].mxu0 }
 0x106   :  { %v3227_v26 = vpop.eup %3226 }
 0x107   :  { %v320_v27 = vadd.f32 1.0, %v3227_v26 }
 0x109   :  { %3228 = vrcp.f32 %v320_v27 }
 0x113   :  { %v3229_v28 = vpop.eup %3228 }
 0x114   :  { %v323_v29 = vmul.f32 2.0, %v3229_v28 }
 0x116   :  { %v2570_v30 = vadd.f32 -1.0, %v323_v29 }
 0x118   :  { %331 = vrot.lane.b32.xlu0 %v2570_v30, %s3353_s26 }
 0x11c   :  { %326 = vrot.lane.b32.xlu0 %v237_v31, %s3354_s28 }
 0x18a   :  { %v332_v32 = vpop.permute.xlu0 %331 }
 0x18b   :  { %v334_v33 = vmul.f32 %v3229_v28, %v332_v32 }
 0x18d   :  { %336 = vrot.lane.b32.xlu1 %v334_v33, %s3354_s28 }
 0x18e   :  { %v327_v34 = vpop.permute.xlu0 %326 }
 0x18f   :  { %v329_v35 = vmul.f32 %v3229_v28, %v327_v34 }
 0x1ff   :  { %v337_v36 = vpop.permute.xlu1 %336 }
 0x200   :  { %v3504_v37 = vadd.f32 %v337_v36, %v329_v35 }
 0x202   :  { %3230 = vtanh.f32 %v3504_v37 }
 0x20c   :  { %v3231_v56 = vpop.eup %3230 }
 0x20d   :  { %342 = vrot.lane.b32.xlu1 %v3231_v56, %s3353_s26 }
 0x27f   :  { %v343_v58 = vpop.permute.xlu1 %342 }
 0x280   :  { %v345_v59 = vmul.f32 %v3229_v28, %v343_v58 }
 0x282   :  { %347 = vrot.lane.b32.xlu0 %v345_v59, %s3354_s28 }
 0x2f4   :  { %v348_v4 = vpop.permute.xlu0 %347 }
 0x2f5   :  { %2805 = vmatmul.mubr.msk.f32.vlgmr.msra.gmra.mrb[2].mxu1 %vm91_vm1, %v348_v4 }
 0x2f6   :  { %3088 = vmatpush3.bf16.msra.mxu1 %v3461_v10  ;;  %2826 = vmatprep.mubr.msk.f32.mxu1 %vm3351_vm0, %v3352_v2 }
 0x2f7   :  { %3089 = vmatprep.subr.bf16.mxu1 %v3350_v1 }
 0x2fa   :  { %3091 = vmatpush3.bf16.msra.mxu1 %v3474_v15 }
 0x2fb   :  { %3098 = vmatprep.subr.bf16.mxu1 %v3350_v1 }
 0x2fd   :  { %2827 = vmatmul.mubr.msk.f32.vlgmr.msra.gmra.mrb[4].mxu1 %vm91_vm1, %v348_v4  ;;  %v193_v4 = vadd.f32 %v3493_v18, %v3587_v61 }
 0x2fe   :  { %3100 = vmatpush3.bf16.msra.mxu1 %v3536_v47  ;;  %2848 = vmatprep.mubr.msk.f32.mxu1 %vm3351_vm0, %v3352_v2 }
 0x2ff   :  { %3101 = vmatprep.subr.bf16.mxu1 %v3350_v1 }
 0x302   :  { %3103 = vmatpush3.bf16.msra.mxu1 %v3558_v54 }
 0x303   :  { %3110 = vmatprep.subr.bf16.mxu1 %v3350_v1 }
 0x3c8   :  { %v417_v7 = vpop.f32.mrb[2].mxu1 }
 0x3c9   :  { %v491_v9 = vadd.f32 %v490_v5, %v417_v7  ;;  %v2806_v11 = vpop.f32.mrb[3].mxu1 }
 0x3cb   :  { %v494_v12 = vadd.f32 %v3614_v8, %v491_v9 }
 0x3cd   :  { %v2573_v13 = vmul.f32 -1.442695, %v494_v12 }
 0x3cf   :  { %3232 = vpow2.f32 %v2573_v13 }
 0x3d0   :  { %v592_v16 = vpop.f32.mrb[4].mxu1 }
 0x3d1   :  { %v596_v17 = vadd.f32 %v592_v16, %v188_v14  ;;  %v2828_v20 = vpop.f32.mrb[5].mxu1 }
 0x3d3   :  { %v2576_v21 = vmul.f32 -1.442695, %v596_v17 }
 0x3d5   :  { %3234 = vpow2.f32 %v2576_v21 }
 0x3d9   :  { %v3233_v22 = vpop.eup %3232 }
 0x3da   :  { %v498_v23 = vadd.f32 1.0, %v3233_v22 }
 0x3dc   :  { %3236 = vrcp.f32 %v498_v23 }
 0x3df   :  { %v3235_v24 = vpop.eup %3234 }
 0x3e0   :  { %v600_v25 = vadd.f32 1.0, %v3235_v24 }
 0x3e2   :  { %3238 = vrcp.f32 %v600_v25 }
 0x3e6   :  { %v3237_v26 = vpop.eup %3236 }
 0x3e7   :  { %v501_v27 = vmul.f32 2.0, %v3237_v26 }
 0x3e9   :  { %v2574_v28 = vadd.f32 -1.0, %v501_v27 }
 0x3eb   :  { %509 = vrot.lane.b32.xlu0 %v2574_v28, %s3353_s26 }
 0x3ec   :  { %v3239_v29 = vpop.eup %3238 }
 0x3ed   :  { %v603_v30 = vmul.f32 2.0, %v3239_v29  ;;  %v605_v36 = vmul.f32 %v3239_v29, %v3504_v37 }
 0x3ef   :  { %504 = vrot.lane.b32.xlu0 %v2567_v19, %s3354_s28  ;;  %v2577_v31 = vadd.f32 -1.0, %v603_v30 }
 0x3f1   :  { %607 = vrot.lane.b32.xlu1 %v2577_v31, %s3353_s26 }
 0x45d   :  { %v510_v34 = vpop.permute.xlu0 %509 }
 0x45e   :  { %v512_v35 = vmul.f32 %v3237_v26, %v510_v34 }
 0x461   :  { %v505_v38 = vpop.permute.xlu0 %504 }
 0x462   :  { %v507_v41 = vmul.f32 %v3237_v26, %v505_v38 }
 0x463   :  { %v608_v32 = vpop.permute.xlu1 %607 }
 0x464   :  { %v610_v33 = vmul.f32 %v3239_v29, %v608_v32 }
 0x466   :  { %612 = vrot.lane.b32.xlu1 %v610_v33, %s3354_s28 }
 0x46a   :  { %514 = vrot.lane.b32.xlu1 %v512_v35, %s3354_s28 }
 0x4d8   :  { %v613_v39 = vpop.permute.xlu1 %612 }
 0x4d9   :  { %v3628_v40 = vadd.f32 %v613_v39, %v605_v36 }
 0x4db   :  { %3240 = vtanh.f32 %v3628_v40 }
 0x4dc   :  { %v515_v42 = vpop.permute.xlu1 %514 }
 0x4dd   :  { %v3631_v44 = vadd.f32 %v515_v42, %v507_v41 }
 0x4df   :  { %3242 = vtanh.f32 %v3631_v44 }
 0x4e5   :  { %v3241_v45 = vpop.eup %3240 }
 0x4e6   :  { %618 = vrot.lane.b32.xlu0 %v3241_v45, %s3353_s26 }
 0x4e9   :  { %v3243_v46 = vpop.eup %3242 }
 0x4ea   :  { %520 = vrot.lane.b32.xlu1 %v3243_v46, %s3353_s26 }
 0x558   :  { %v619_v48 = vpop.permute.xlu0 %618 }
 0x559   :  { %v621_v37 = vmul.f32 %v3239_v29, %v619_v48 }
 0x55b   :  { %623 = vrot.lane.b32.xlu0 %v621_v37, %s3354_s28 }
 0x55c   :  { %v521_v49 = vpop.permute.xlu1 %520 }
 0x55d   :  { %v523_v50 = vmul.f32 %v3237_v26, %v521_v49 }
 0x55f   :  { %698 = vrot.lane.b32.xlu1 %v523_v50, %s3354_s28 }
 0x5cd   :  { %v624_v52 = vpop.permute.xlu0 %623 }
 0x5ce   :  { %2838 = vmatmul.mubr.msk.f32.vlgmr.msra.gmra.mrb[10].mxu0 %vm91_vm1, %v624_v52 }
 0x5cf   :  { %3106 = vmatpush3.bf16.msra.mxu0 %v3461_v10  ;;  %2859 = vmatprep.mubr.msk.f32.mxu0 %vm3351_vm0, %v3352_v2 }
 0x5d0   :  { %3107 = vmatprep.subr.bf16.mxu0 %v3350_v1 }
 0x5d1   :  { %v699_v53 = vpop.permute.xlu1 %698 }
 0x5d2   :  { %2849 = vmatmul.mubr.msk.f32.vlgmr.msra.gmra.mrb[6].mxu1 %vm91_vm1, %v699_v53 }
 0x5d3   :  { %3109 = vmatpush3.bf16.msra.mxu0 %v3474_v15  ;;  %3112 = vmatpush3.bf16.msra.mxu1 %v3524_v43 }
 0x5d4   :  { %3116 = vmatprep.subr.bf16.mxu0 %v3350_v1  ;;  %3113 = vmatprep.subr.bf16.mxu1 %v3350_v1 }
 0x5d5   :  { %2870 = vmatprep.mubr.msk.f32.mxu1 %vm3351_vm0, %v3352_v2 }
 0x5d6   :  { %2860 = vmatmul.mubr.msk.f32.vlgmr.msra.gmra.mrb[12].mxu0 %vm91_vm1, %v624_v52  ;;  %v198_v52 = vadd.f32 %v3585_v60, %v3493_v18 }
 0x5d7   :  { %3118 = vmatpush3.bf16.msra.mxu0 %v3536_v47  ;;  %3115 = vmatpush3.bf16.msra.mxu1 %v3548_v51 }
 0x5d8   :  { %3119 = vmatprep.subr.bf16.mxu0 %v3350_v1  ;;  %2881 = vmatprep.mubr.msk.f32.mxu0 %vm3351_vm0, %v3352_v2 }
 0x5d9   :  { %3122 = vmatprep.subr.bf16.mxu1 %v3350_v1 }
 0x5db   :  { %3121 = vmatpush3.bf16.msra.mxu0 %v3558_v54 }
 0x5dc   :  { %3128 = vmatprep.subr.bf16.mxu0 %v3350_v1 }
 0x6a1   :  { %v693_v55 = vpop.f32.mrb[10].mxu0 }
 0x6a2   :  { %v2839_v56 = vpop.f32.mrb[11].mxu0 }
 0x6a5   :  { %v768_v57 = vpop.f32.mrb[6].mxu1 }
 0x6a6   :  { %v769_v58 = vadd.f32 %v768_v57, %v693_v55  ;;  %v2850_v59 = vpop.f32.mrb[7].mxu1 }
 0x6a8   :  { %v772_v5 = vadd.f32 %v3614_v8, %v769_v58 }
 0x6a9   :  { %v866_v6 = vpop.f32.mrb[12].mxu0 }
 0x6aa   :  { %v2580_v7 = vmul.f32 -1.442695, %v772_v5  ;;  %v870_v9 = vadd.f32 %v866_v6, %v193_v4  ;;  %v2861_v11 = vpop.f32.mrb[13].mxu0 }
 0x6ac   :  { %3244 = vpow2.f32 %v2580_v7  ;;  %v2583_v12 = vmul.f32 -1.442695, %v870_v9 }
 0x6ae   :  { %3246 = vpow2.f32 %v2583_v12 }
 0x6b6   :  { %v3245_v13 = vpop.eup %3244 }
 0x6b7   :  { %v776_v14 = vadd.f32 1.0, %v3245_v13 }
 0x6b8   :  { %v3247_v16 = vpop.eup %3246 }
 0x6b9   :  { %3248 = vrcp.f32 %v776_v14  ;;  %v874_v17 = vadd.f32 1.0, %v3247_v16 }
 0x6bb   :  { %3250 = vrcp.f32 %v874_v17 }
 0x6c3   :  { %v3249_v20 = vpop.eup %3248 }
 0x6c4   :  { %v779_v21 = vmul.f32 2.0, %v3249_v20  ;;  %v781_v29 = vmul.f32 %v3249_v20, %v3631_v44 }
 0x6c5   :  { %v3251_v22 = vpop.eup %3250 }
 0x6c6   :  { %v2581_v23 = vadd.f32 -1.0, %v779_v21  ;;  %v877_v61 = vmul.f32 2.0, %v3251_v22  ;;  %v879_v31 = vmul.f32 %v3251_v22, %v3628_v40 }
 0x6c8   :  { %783 = vrot.lane.b32.xlu1 %v2581_v23, %s3353_s26  ;;  %v2584_v24 = vadd.f32 -1.0, %v877_v61 }
 0x6ca   :  { %881 = vrot.lane.b32.xlu0 %v2584_v24, %s3353_s26 }
 0x73a   :  { %v784_v25 = vpop.permute.xlu1 %783 }
 0x73b   :  { %v786_v26 = vmul.f32 %v3249_v20, %v784_v25 }
 0x73c   :  { %v882_v27 = vpop.permute.xlu0 %881 }
 0x73d   :  { %v884_v28 = vmul.f32 %v3251_v22, %v882_v27  ;;  %788 = vrot.lane.b32.xlu1 %v786_v26, %s3354_s28 }
 0x73f   :  { %886 = vrot.lane.b32.xlu0 %v884_v28, %s3354_s28 }
 0x7af   :  { %v789_v19 = vpop.permute.xlu1 %788 }
 0x7b0   :  { %v3667_v30 = vadd.f32 %v789_v19, %v781_v29 }
 0x7b1   :  { %v887_v32 = vpop.permute.xlu0 %886 }
 0x7b2   :  { %3252 = vtanh.f32 %v3667_v30  ;;  %v3671_v33 = vadd.f32 %v887_v32, %v879_v31 }
 0x7b4   :  { %3254 = vtanh.f32 %v3671_v33 }
 0x7bc   :  { %v3253_v34 = vpop.eup %3252 }
 0x7bd   :  { %794 = vrot.lane.b32.xlu1 %v3253_v34, %s3353_s26 }
 0x7be   :  { %v3255_v35 = vpop.eup %3254 }
 0x7bf   :  { %892 = vrot.lane.b32.xlu0 %v3255_v35, %s3353_s26 }
 0x82f   :  { %v795_v36 = vpop.permute.xlu1 %794 }
 0x830   :  { %v797_v38 = vmul.f32 %v3249_v20, %v795_v36 }
 0x831   :  { %v893_v39 = vpop.permute.xlu0 %892 }
 0x832   :  { %v895_v41 = vmul.f32 %v3251_v22, %v893_v39  ;;  %972 = vrot.lane.b32.xlu1 %v797_v38, %s3354_s28 }
 0x834   :  { %897 = vrot.lane.b32.xlu0 %v895_v41, %s3354_s28  ;;  %v203_v41 = vadd.f32 %v3493_v18, %v3591_v63 }
 0x8a4   :  { %v973_v40 = vpop.permute.xlu1 %972 }
 0x8a5   :  { %2882 = vmatmul.mubr.msk.f32.vlgmr.msra.gmra.mrb[14].mxu0 %vm91_vm1, %v973_v40 }
 0x8a6   :  { %v898_v42 = vpop.permute.xlu0 %897  ;;  %3130 = vmatpush3.bf16.msra.mxu0 %v3524_v43  ;;  %2903 = vmatprep.mubr.msk.f32.mxu0 %vm3351_vm0, %v3352_v2 }
 0x8a7   :  { %2871 = vmatmul.mubr.msk.f32.vlgmr.msra.gmra.mrb[8].mxu1 %vm91_vm1, %v898_v42  ;;  %3131 = vmatprep.subr.bf16.mxu0 %v3350_v1 }
 0x8a8   :  { %3124 = vmatpush3.bf16.msra.mxu1 %v3461_v10  ;;  %2892 = vmatprep.mubr.msk.f32.mxu1 %vm3351_vm0, %v3352_v2 }
 0x8a9   :  { %3125 = vmatprep.subr.bf16.mxu1 %v3350_v1 }
 0x8aa   :  { %3133 = vmatpush3.bf16.msra.mxu0 %v3548_v51 }
 0x8ab   :  { %3140 = vmatprep.subr.bf16.mxu0 %v3350_v1 }
 0x8ac   :  { %3127 = vmatpush3.bf16.msra.mxu1 %v3474_v15 }
 0x8ad   :  { %3134 = vmatprep.subr.bf16.mxu1 %v3350_v1 }
 0x8af   :  { %2893 = vmatmul.mubr.msk.f32.vlgmr.msra.gmra.mrb[10].mxu1 %vm91_vm1, %v898_v42 }
 0x8b0   :  { %3136 = vmatpush3.bf16.msra.mxu1 %v3536_v47  ;;  %2914 = vmatprep.mubr.msk.f32.mxu1 %vm3351_vm0, %v3352_v2 }
 0x8b1   :  { %3137 = vmatprep.subr.bf16.mxu1 %v3350_v1 }
 0x8b4   :  { %3139 = vmatpush3.bf16.msra.mxu1 %v3558_v54 }
 0x8b5   :  { %3146 = vmatprep.subr.bf16.mxu1 %v3350_v1 }
 0x978   :  { %v1042_v44 = vpop.f32.mrb[14].mxu0 }
 0x979   :  { %v2883_v45 = vpop.f32.mrb[15].mxu0 }
 0x97a   :  { %v967_v46 = vpop.f32.mrb[8].mxu1 }
 0x97b   :  { %v1043_v48 = vadd.f32 %v1042_v44, %v967_v46  ;;  %v2872_v37 = vpop.f32.mrb[9].mxu1 }
 0x97d   :  { %v1046_v49 = vadd.f32 %v3614_v8, %v1043_v48 }
 0x97f   :  { %v2587_v50 = vmul.f32 -1.442695, %v1046_v49 }
 0x981   :  { %3256 = vpow2.f32 %v2587_v50 }
 0x982   :  { %v1140_v53 = vpop.f32.mrb[10].mxu1 }
 0x983   :  { %v1144_v55 = vadd.f32 %v1140_v53, %v198_v52  ;;  %v2894_v56 = vpop.f32.mrb[11].mxu1 }
 0x985   :  { %v2590_v57 = vmul.f32 -1.442695, %v1144_v55 }
 0x987   :  { %3258 = vpow2.f32 %v2590_v57 }
 0x98b   :  { %v3257_v58 = vpop.eup %3256 }
 0x98c   :  { %v1050_v59 = vadd.f32 1.0, %v3257_v58 }
 0x98e   :  { %3260 = vrcp.f32 %v1050_v59 }
 0x991   :  { %v3259_v4 = vpop.eup %3258 }
 0x992   :  { %v1148_v5 = vadd.f32 1.0, %v3259_v4 }
 0x994   :  { %3262 = vrcp.f32 %v1148_v5 }
 0x998   :  { %v3261_v6 = vpop.eup %3260 }
 0x999   :  { %v1053_v7 = vmul.f32 2.0, %v3261_v6  ;;  %v1055_v20 = vmul.f32 %v3261_v6, %v3667_v30 }
 0x99b   :  { %v2588_v9 = vadd.f32 -1.0, %v1053_v7 }
 0x99d   :  { %1057 = vrot.lane.b32.xlu1 %v2588_v9, %s3353_s26 }
 0x99e   :  { %v3263_v11 = vpop.eup %3262 }
 0x99f   :  { %v1151_v12 = vmul.f32 2.0, %v3263_v11  ;;  %v1153_v23 = vmul.f32 %v3263_v11, %v3671_v33 }
 0x9a1   :  { %v2591_v60 = vadd.f32 -1.0, %v1151_v12 }
 0x9a3   :  { %1155 = vrot.lane.b32.xlu0 %v2591_v60, %s3353_s26 }
 0xa0f   :  { %v1058_v13 = vpop.permute.xlu1 %1057 }
 0xa10   :  { %v1060_v14 = vmul.f32 %v3261_v6, %v1058_v13 }
 0xa12   :  { %1062 = vrot.lane.b32.xlu1 %v1060_v14, %s3354_s28 }
 0xa15   :  { %v1156_v16 = vpop.permute.xlu0 %1155 }
 0xa16   :  { %v1158_v17 = vmul.f32 %v3263_v11, %v1156_v16 }
 0xa18   :  { %1160 = vrot.lane.b32.xlu0 %v1158_v17, %s3354_s28 }
 0xa84   :  { %v1063_v21 = vpop.permute.xlu1 %1062 }
 0xa85   :  { %v3707_v22 = vadd.f32 %v1063_v21, %v1055_v20 }
 0xa87   :  { %3264 = vtanh.f32 %v3707_v22 }
 0xa8a   :  { %v1161_v61 = vpop.permute.xlu0 %1160 }
 0xa8b   :  { %v3711_v24 = vadd.f32 %v1161_v61, %v1153_v23 }
 0xa8d   :  { %3266 = vtanh.f32 %v3711_v24 }
 0xa91   :  { %v3265_v25 = vpop.eup %3264 }
 0xa92   :  { %1068 = vrot.lane.b32.xlu1 %v3265_v25, %s3353_s26 }
 0xa97   :  { %v3267_v26 = vpop.eup %3266 }
 0xa98   :  { %1166 = vrot.lane.b32.xlu0 %v3267_v26, %s3353_s26 }
 0xb04   :  { %v1069_v27 = vpop.permute.xlu1 %1068 }
 0xb05   :  { %v1071_v28 = vmul.f32 %v3261_v6, %v1069_v27 }
 0xb07   :  { %1246 = vrot.lane.b32.xlu1 %v1071_v28, %s3354_s28 }
 0xb0a   :  { %v1167_v29 = vpop.permute.xlu0 %1166 }
 0xb0b   :  { %v1169_v19 = vmul.f32 %v3263_v11, %v1167_v29  ;;  %v208_v29 = vadd.f32 %v3589_v62, %v3493_v18 }
 0xb0d   :  { %1171 = vrot.lane.b32.xlu0 %v1169_v19, %s3354_s28 }
 0xb79   :  { %v1247_v30 = vpop.permute.xlu1 %1246 }
 0xb7a   :  { %2915 = vmatmul.mubr.msk.f32.vlgmr.msra.gmra.mrb[12].mxu1 %vm91_vm1, %v1247_v30 }
 0xb7b   :  { %3148 = vmatpush3.bf16.msra.mxu1 %v3524_v43  ;;  %2936 = vmatprep.mubr.msk.f32.mxu1 %vm3351_vm0, %v3352_v2 }
 0xb7c   :  { %3149 = vmatprep.subr.bf16.mxu1 %v3350_v1 }
 0xb7f   :  { %v1172_v31 = vpop.permute.xlu0 %1171  ;;  %3151 = vmatpush3.bf16.msra.mxu1 %v3548_v51 }
 0xb80   :  { %2904 = vmatmul.mubr.msk.f32.vlgmr.msra.gmra.mrb[16].mxu0 %vm91_vm1, %v1172_v31  ;;  %3158 = vmatprep.subr.bf16.mxu1 %v3350_v1 }
 0xb81   :  { %3142 = vmatpush3.bf16.msra.mxu0 %v3461_v10  ;;  %2925 = vmatprep.mubr.msk.f32.mxu0 %vm3351_vm0, %v3352_v2 }
 0xb82   :  { %3143 = vmatprep.subr.bf16.mxu0 %v3350_v1 }
 0xb85   :  { %3145 = vmatpush3.bf16.msra.mxu0 %v3474_v15 }
 0xb86   :  { %3152 = vmatprep.subr.bf16.mxu0 %v3350_v1 }
 0xb88   :  { %2926 = vmatmul.mubr.msk.f32.vlgmr.msra.gmra.mrb[18].mxu0 %vm91_vm1, %v1172_v31 }
 0xb89   :  { %3154 = vmatpush3.bf16.msra.mxu0 %v3536_v47  ;;  %2947 = vmatprep.mubr.msk.f32.mxu0 %vm3351_vm0, %v3352_v2 }
 0xb8a   :  { %3155 = vmatprep.subr.bf16.mxu0 %v3350_v1 }
 0xb8d   :  { %3157 = vmatpush3.bf16.msra.mxu0 %v3558_v54 }
 0xb8e   :  { %3164 = vmatprep.subr.bf16.mxu0 %v3350_v1 }
 0xc4d   :  { %v1316_v32 = vpop.f32.mrb[12].mxu1 }
 0xc4e   :  { %v2916_v33 = vpop.f32.mrb[13].mxu1 }
 0xc53   :  { %v1241_v34 = vpop.f32.mrb[16].mxu0 }
 0xc54   :  { %v1317_v35 = vadd.f32 %v1316_v32, %v1241_v34  ;;  %v2905_v36 = vpop.f32.mrb[17].mxu0 }
 0xc56   :  { %v1320_v38 = vadd.f32 %v3614_v8, %v1317_v35 }
 0xc58   :  { %v2594_v39 = vmul.f32 -1.442695, %v1320_v38 }
 0xc5a   :  { %3268 = vpow2.f32 %v2594_v39 }
 0xc5b   :  { %v1414_v40 = vpop.f32.mrb[18].mxu0 }
 0xc5c   :  { %v1418_v42 = vadd.f32 %v1414_v40, %v203_v41  ;;  %v2927_v44 = vpop.f32.mrb[19].mxu0 }
 0xc5e   :  { %v2597_v45 = vmul.f32 -1.442695, %v1418_v42 }
 0xc60   :  { %3270 = vpow2.f32 %v2597_v45 }
 0xc64   :  { %v3269_v46 = vpop.eup %3268 }
 0xc65   :  { %v1324_v48 = vadd.f32 1.0, %v3269_v46 }
 0xc67   :  { %3272 = vrcp.f32 %v1324_v48 }
 0xc6a   :  { %v3271_v37 = vpop.eup %3270 }
 0xc6b   :  { %v1422_v49 = vadd.f32 1.0, %v3271_v37 }
 0xc6d   :  { %3274 = vrcp.f32 %v1422_v49 }
 0xc71   :  { %v3273_v50 = vpop.eup %3272 }
 0xc72   :  { %v1327_v52 = vmul.f32 2.0, %v3273_v50  ;;  %v1329_v5 = vmul.f32 %v3273_v50, %v3707_v22 }
 0xc74   :  { %v2595_v53 = vadd.f32 -1.0, %v1327_v52 }
 0xc76   :  { %1331 = vrot.lane.b32.xlu1 %v2595_v53, %s3353_s26 }
 0xc77   :  { %v3275_v55 = vpop.eup %3274 }
 0xc78   :  { %v1425_v56 = vmul.f32 2.0, %v3275_v55  ;;  %v1427_v9 = vmul.f32 %v3275_v55, %v3711_v24 }
 0xc7a   :  { %v2598_v63 = vadd.f32 -1.0, %v1425_v56 }
 0xc7c   :  { %1429 = vrot.lane.b32.xlu0 %v2598_v63, %s3353_s26 }
 0xce8   :  { %v1332_v57 = vpop.permute.xlu1 %1331 }
 0xce9   :  { %v1334_v58 = vmul.f32 %v3273_v50, %v1332_v57 }
 0xceb   :  { %1336 = vrot.lane.b32.xlu1 %v1334_v58, %s3354_s28 }
 0xcee   :  { %v1430_v59 = vpop.permute.xlu0 %1429 }
 0xcef   :  { %v1432_v4 = vmul.f32 %v3275_v55, %v1430_v59 }
 0xcf1   :  { %1434 = vrot.lane.b32.xlu0 %v1432_v4, %s3354_s28 }
 0xd5d   :  { %v1337_v6 = vpop.permute.xlu1 %1336 }
 0xd5e   :  { %v3747_v7 = vadd.f32 %v1337_v6, %v1329_v5 }
 0xd60   :  { %3276 = vtanh.f32 %v3747_v7 }
 0xd63   :  { %v1435_v11 = vpop.permute.xlu0 %1434 }
 0xd64   :  { %v3751_v12 = vadd.f32 %v1435_v11, %v1427_v9 }
 0xd66   :  { %3278 = vtanh.f32 %v3751_v12 }
 0xd6a   :  { %v3277_v60 = vpop.eup %3276 }
 0xd6b   :  { %1342 = vrot.lane.b32.xlu1 %v3277_v60, %s3353_s26 }
 0xd70   :  { %v3279_v13 = vpop.eup %3278 }
 0xd71   :  { %1440 = vrot.lane.b32.xlu0 %v3279_v13, %s3353_s26 }
 0xddd   :  { %v1343_v14 = vpop.permute.xlu1 %1342 }
 0xdde   :  { %v1345_v16 = vmul.f32 %v3273_v50, %v1343_v14 }
 0xde0   :  { %1520 = vrot.lane.b32.xlu1 %v1345_v16, %s3354_s28  ;;  %v213_v16 = vadd.f32 %v3493_v18, %v3595_v3 }
 0xde3   :  { %v1441_v17 = vpop.permute.xlu0 %1440 }
 0xde4   :  { %v1443_v20 = vmul.f32 %v3275_v55, %v1441_v17 }
 0xde6   :  { %1445 = vrot.lane.b32.xlu0 %v1443_v20, %s3354_s28 }
 0xe52   :  { %v1521_v21 = vpop.permute.xlu1 %1520 }
 0xe53   :  { %2948 = vmatmul.mubr.msk.f32.vlgmr.msra.gmra.mrb[20].mxu0 %vm91_vm1, %v1521_v21 }
 0xe54   :  { %3166 = vmatpush3.bf16.msra.mxu0 %v3524_v43  ;;  %2969 = vmatprep.mubr.msk.f32.mxu0 %vm3351_vm0, %v3352_v2 }
 0xe55   :  { %3167 = vmatprep.subr.bf16.mxu0 %v3350_v1 }
 0xe58   :  { %v1446_v22 = vpop.permute.xlu0 %1445  ;;  %3169 = vmatpush3.bf16.msra.mxu0 %v3548_v51 }
 0xe59   :  { %2937 = vmatmul.mubr.msk.f32.vlgmr.msra.gmra.mrb[14].mxu1 %vm91_vm1, %v1446_v22  ;;  %3176 = vmatprep.subr.bf16.mxu0 %v3350_v1 }
 0xe5a   :  { %3160 = vmatpush3.bf16.msra.mxu1 %v3461_v10  ;;  %2958 = vmatprep.mubr.msk.f32.mxu1 %vm3351_vm0, %v3352_v2 }
 0xe5b   :  { %3161 = vmatprep.subr.bf16.mxu1 %v3350_v1 }
 0xe5e   :  { %3163 = vmatpush3.bf16.msra.mxu1 %v3474_v15 }
 0xe5f   :  { %3170 = vmatprep.subr.bf16.mxu1 %v3350_v1 }
 0xe61   :  { %2959 = vmatmul.mubr.msk.f32.vlgmr.msra.gmra.mrb[16].mxu1 %vm91_vm1, %v1446_v22 }
 0xe62   :  { %3172 = vmatpush3.bf16.msra.mxu1 %v3536_v47  ;;  %2980 = vmatprep.mubr.msk.f32.mxu1 %vm3351_vm0, %v3352_v2 }
 0xe63   :  { %3173 = vmatprep.subr.bf16.mxu1 %v3350_v1 }
 0xe66   :  { %3175 = vmatpush3.bf16.msra.mxu1 %v3558_v54 }
 0xe67   :  { %3182 = vmatprep.subr.bf16.mxu1 %v3350_v1 }
 0xf26   :  { %v1590_v23 = vpop.f32.mrb[20].mxu0 }
 0xf27   :  { %v2949_v61 = vpop.f32.mrb[21].mxu0 }
 0xf2c   :  { %v1515_v24 = vpop.f32.mrb[14].mxu1 }
 0xf2d   :  { %v1591_v25 = vadd.f32 %v1590_v23, %v1515_v24  ;;  %v2938_v26 = vpop.f32.mrb[15].mxu1 }
 0xf2f   :  { %v1594_v27 = vadd.f32 %v3614_v8, %v1591_v25 }
 0xf31   :  { %v2601_v28 = vmul.f32 -1.442695, %v1594_v27 }
 0xf33   :  { %3280 = vpow2.f32 %v2601_v28 }
 0xf34   :  { %v1688_v19 = vpop.f32.mrb[16].mxu1 }
 0xf35   :  { %v1692_v30 = vadd.f32 %v1688_v19, %v208_v29  ;;  %v2960_v31 = vpop.f32.mrb[17].mxu1 }
 0xf37   :  { %v2604_v32 = vmul.f32 -1.442695, %v1692_v30 }
 0xf39   :  { %3282 = vpow2.f32 %v2604_v32 }
 0xf3d   :  { %v3281_v33 = vpop.eup %3280 }
 0xf3e   :  { %v1598_v34 = vadd.f32 1.0, %v3281_v33 }
 0xf40   :  { %3284 = vrcp.f32 %v1598_v34 }
 0xf43   :  { %v3283_v35 = vpop.eup %3282 }
 0xf44   :  { %v1696_v36 = vadd.f32 1.0, %v3283_v35 }
 0xf46   :  { %3286 = vrcp.f32 %v1696_v36 }
 0xf4a   :  { %v3285_v38 = vpop.eup %3284 }
 0xf4b   :  { %v1601_v39 = vmul.f32 2.0, %v3285_v38  ;;  %v1603_v37 = vmul.f32 %v3285_v38, %v3747_v7 }
 0xf4d   :  { %v2602_v41 = vadd.f32 -1.0, %v1601_v39 }
 0xf4f   :  { %1605 = vrot.lane.b32.xlu1 %v2602_v41, %s3353_s26 }
 0xf50   :  { %v3287_v40 = vpop.eup %3286 }
 0xf51   :  { %v1699_v42 = vmul.f32 2.0, %v3287_v40  ;;  %v1701_v52 = vmul.f32 %v3287_v40, %v3751_v12 }
 0xf53   :  { %v2605_v62 = vadd.f32 -1.0, %v1699_v42 }
 0xf55   :  { %1703 = vrot.lane.b32.xlu0 %v2605_v62, %s3353_s26 }
 0xfc1   :  { %v1606_v44 = vpop.permute.xlu1 %1605 }
 0xfc2   :  { %v1608_v45 = vmul.f32 %v3285_v38, %v1606_v44 }
 0xfc4   :  { %1610 = vrot.lane.b32.xlu1 %v1608_v45, %s3354_s28 }
 0xfc7   :  { %v1704_v46 = vpop.permute.xlu0 %1703 }
 0xfc8   :  { %v1706_v48 = vmul.f32 %v3287_v40, %v1704_v46 }
 0xfca   :  { %1708 = vrot.lane.b32.xlu0 %v1706_v48, %s3354_s28 }
0x1036   :  { %v1611_v49 = vpop.permute.xlu1 %1610 }
0x1037   :  { %v3787_v50 = vadd.f32 %v1611_v49, %v1603_v37 }
0x1039   :  { %3288 = vtanh.f32 %v3787_v50 }
0x103c   :  { %v1709_v53 = vpop.permute.xlu0 %1708 }
0x103d   :  { %v3791_v55 = vadd.f32 %v1709_v53, %v1701_v52  ;;  %v3322_v52 = vld [vmem:[%s3898_s5] ss:$0 sm:$0xff] }
0x103f   :  { %3290 = vtanh.f32 %v3791_v55 }
0x1043   :  { %v3289_v56 = vpop.eup %3288 }
0x1044   :  { %1616 = vrot.lane.b32.xlu1 %v3289_v56, %s3353_s26 }
0x1049   :  { %v3291_v63 = vpop.eup %3290 }
0x104a   :  { %1714 = vrot.lane.b32.xlu0 %v3291_v63, %s3353_s26 }
0x10b6   :  { %v1617_v57 = vpop.permute.xlu1 %1616 }
0x10b7   :  { %v1619_v58 = vmul.f32 %v3285_v38, %v1617_v57 }
0x10b9   :  { %1794 = vrot.lane.b32.xlu1 %v1619_v58, %s3354_s28 }
0x10bc   :  { %v1715_v59 = vpop.permute.xlu0 %1714 }
0x10bd   :  { %v1717_v4 = vmul.f32 %v3287_v40, %v1715_v59 }
0x10bf   :  { %1719 = vrot.lane.b32.xlu0 %v1717_v4, %s3354_s28 }
0x112b   :  { %v1795_v5 = vpop.permute.xlu1 %1794 }
0x112c   :  { %2981 = vmatmul.mubr.msk.f32.vlgmr.msra.gmra.mrb[18].mxu1 %vm91_vm1, %v1795_v5 }
0x112d   :  { %3184 = vmatpush3.bf16.msra.mxu1 %v3524_v43  ;;  %3002 = vmatprep.mubr.msk.f32.mxu1 %vm3351_vm0, %v3352_v2 }
0x112e   :  { %3185 = vmatprep.subr.bf16.mxu1 %v3350_v1 }
0x1131   :  { %v1720_v6 = vpop.permute.xlu0 %1719  ;;  %3187 = vmatpush3.bf16.msra.mxu1 %v3548_v51 }
0x1132   :  { %2970 = vmatmul.mubr.msk.f32.vlgmr.msra.gmra.mrb[22].mxu0 %vm91_vm1, %v1720_v6  ;;  %3194 = vmatprep.subr.bf16.mxu1 %v3350_v1 }
0x1133   :  { %3178 = vmatpush3.bf16.msra.mxu0 %v3461_v10  ;;  %2991 = vmatprep.mubr.msk.f32.mxu0 %vm3351_vm0, %v3352_v2 }
0x1134   :  { %3179 = vmatprep.subr.bf16.mxu0 %v3350_v1 }
0x1137   :  { %3181 = vmatpush3.bf16.msra.mxu0 %v3474_v15 }
0x1138   :  { %3188 = vmatprep.subr.bf16.mxu0 %v3350_v1 }
0x113a   :  { %2992 = vmatmul.mubr.msk.f32.vlgmr.msra.gmra.mrb[24].mxu0 %vm91_vm1, %v1720_v6 }
0x113b   :  { %3190 = vmatpush3.bf16.msra.mxu0 %v3536_v47  ;;  %3013 = vmatprep.mubr.msk.f32.mxu0 %vm3351_vm0, %v3352_v2 }
0x113c   :  { %3191 = vmatprep.subr.bf16.mxu0 %v3350_v1 }
0x113f   :  { %3193 = vmatpush3.bf16.msra.mxu0 %v3558_v54 }
0x1140   :  { %3200 = vmatprep.subr.bf16.mxu0 %v3350_v1 }
0x11ff   :  { %v1864_v7 = vpop.f32.mrb[18].mxu1 }
0x1200   :  { %v2982_v9 = vpop.f32.mrb[19].mxu1 }
0x1205   :  { %v1789_v11 = vpop.f32.mrb[22].mxu0 }
0x1206   :  { %v1865_v12 = vadd.f32 %v1864_v7, %v1789_v11  ;;  %v2971_v60 = vpop.f32.mrb[23].mxu0 }
0x1208   :  { %v1868_v13 = vadd.f32 %v3614_v8, %v1865_v12 }
0x120a   :  { %v2608_v14 = vmul.f32 -1.442695, %v1868_v13 }
0x120c   :  { %3292 = vpow2.f32 %v2608_v14 }
0x120d   :  { %v1962_v17 = vpop.f32.mrb[24].mxu0 }
0x120e   :  { %v1966_v20 = vadd.f32 %v1962_v17, %v213_v16  ;;  %v2993_v21 = vpop.f32.mrb[25].mxu0 }
0x1210   :  { %v2611_v22 = vmul.f32 -1.442695, %v1966_v20 }
0x1212   :  { %3294 = vpow2.f32 %v2611_v22 }
0x1216   :  { %v3293_v23 = vpop.eup %3292 }
0x1217   :  { %v1872_v61 = vadd.f32 1.0, %v3293_v23 }
0x1219   :  { %3296 = vrcp.f32 %v1872_v61 }
0x121c   :  { %v3295_v24 = vpop.eup %3294 }
0x121d   :  { %v1970_v25 = vadd.f32 1.0, %v3295_v24 }
0x121f   :  { %3298 = vrcp.f32 %v1970_v25 }
0x1223   :  { %v3297_v26 = vpop.eup %3296 }
0x1224   :  { %v1875_v27 = vmul.f32 2.0, %v3297_v26  ;;  %v1877_v33 = vmul.f32 %v3297_v26, %v3787_v50 }
0x1226   :  { %v2609_v28 = vadd.f32 -1.0, %v1875_v27 }
0x1228   :  { %1879 = vrot.lane.b32.xlu1 %v2609_v28, %s3353_s26 }
0x1229   :  { %v3299_v29 = vpop.eup %3298 }
0x122a   :  { %v1973_v19 = vmul.f32 2.0, %v3299_v29  ;;  %v1975_v36 = vmul.f32 %v3299_v29, %v3791_v55 }
0x122c   :  { %v2612_v18 = vadd.f32 -1.0, %v1973_v19 }
0x122e   :  { %1977 = vrot.lane.b32.xlu0 %v2612_v18, %s3353_s26 }
0x129a   :  { %v1880_v3 = vpop.permute.xlu1 %1879 }
0x129b   :  { %v1882_v30 = vmul.f32 %v3297_v26, %v1880_v3 }
0x129d   :  { %1884 = vrot.lane.b32.xlu1 %v1882_v30, %s3354_s28 }
0x12a0   :  { %v1978_v31 = vpop.permute.xlu0 %1977 }
0x12a1   :  { %v1980_v32 = vmul.f32 %v3299_v29, %v1978_v31 }
0x12a3   :  { %1982 = vrot.lane.b32.xlu0 %v1980_v32, %s3354_s28 }
0x130f   :  { %v1885_v34 = vpop.permute.xlu1 %1884 }
0x1310   :  { %v3827_v35 = vadd.f32 %v1885_v34, %v1877_v33 }
0x1312   :  { %3300 = vtanh.f32 %v3827_v35 }
0x1315   :  { %v1983_v38 = vpop.permute.xlu0 %1982 }
0x1316   :  { %v3831_v39 = vadd.f32 %v1983_v38, %v1975_v36 }
0x1318   :  { %3302 = vtanh.f32 %v3831_v39 }
0x131c   :  { %v3301_v41 = vpop.eup %3300 }
0x131d   :  { %1890 = vrot.lane.b32.xlu1 %v3301_v41, %s3353_s26 }
0x1322   :  { %v3303_v40 = vpop.eup %3302 }
0x1323   :  { %1988 = vrot.lane.b32.xlu0 %v3303_v40, %s3353_s26 }
0x138f   :  { %v1891_v42 = vpop.permute.xlu1 %1890 }
0x1390   :  { %v1893_v62 = vmul.f32 %v3297_v26, %v1891_v42 }
0x1392   :  { %2068 = vrot.lane.b32.xlu1 %v1893_v62, %s3354_s28 }
0x1395   :  { %v1989_v44 = vpop.permute.xlu0 %1988 }
0x1396   :  { %v1991_v45 = vmul.f32 %v3299_v29, %v1989_v44  ;;  %v2442_v44 = vld [vmem:[#allocation4] sm:$0xff] }
0x1398   :  { %1993 = vrot.lane.b32.xlu0 %v1991_v45, %s3354_s28  ;;  %v2444_v45 = vld [vmem:[#allocation4 + $0x10] sm:$0xff] }
0x1404   :  { %v2069_v46 = vpop.permute.xlu1 %2068 }
0x1405   :  { %3014 = vmatmul.mubr.msk.f32.vlgmr.msra.gmra.mrb[26].mxu0 %vm91_vm1, %v2069_v46 }
0x1406   :  { %3202 = vmatpush3.bf16.msra.mxu0 %v3524_v43  ;;  %3035 = vmatprep.mubr.msk.f32.mxu0 %vm3351_vm0, %v3352_v2 }
0x1407   :  { %3203 = vmatprep.subr.bf16.mxu0 %v3350_v1 }
0x140a   :  { %v1994_v48 = vpop.permute.xlu0 %1993  ;;  %3205 = vmatpush3.bf16.msra.mxu0 %v3548_v51 }
0x140b   :  { %3003 = vmatmul.mubr.msk.f32.vlgmr.msra.gmra.mrb[20].mxu1 %vm91_vm1, %v1994_v48  ;;  %3212 = vmatprep.subr.bf16.mxu0 %v3350_v1 }
0x140c   :  { %3196 = vmatpush3.bf16.msra.mxu1 %v3461_v10  ;;  %3024 = vmatprep.mubr.msk.f32.mxu1 %vm3351_vm0, %v3352_v2 }
0x140d   :  { %3197 = vmatprep.subr.bf16.mxu1 %v3350_v1 }
0x1410   :  { %3199 = vmatpush3.bf16.msra.mxu1 %v3474_v15 }
0x1411   :  { %3206 = vmatprep.subr.bf16.mxu1 %v3350_v1 }
0x1413   :  { %3025 = vmatmul.mubr.msk.f32.vlgmr.msra.gmra.mrb[22].mxu1 %vm91_vm1, %v1994_v48  ;;  %v2445_v48 = vld [vmem:[#allocation4 + $0x18] sm:$0xff] }
0x1414   :  { %3208 = vmatpush3.bf16.msra.mxu1 %v3536_v47  ;;  %3046 = vmatprep.mubr.msk.f32.mxu1 %vm3351_vm0, %v3352_v2  ;;  %v218_v47 = vadd.f32 %v3322_v52, %v3593_v0 }
0x1415   :  { %3209 = vmatprep.subr.bf16.mxu1 %v3350_v1 }
0x1418   :  { %3211 = vmatpush3.bf16.msra.mxu1 %v3558_v54 }
0x14d8   :  { %v2138_v10 = vpop.f32.mrb[26].mxu0 }
0x14d9   :  { %v3015_v43 = vpop.f32.mrb[27].mxu0 }
0x14de   :  { %v2063_v51 = vpop.f32.mrb[20].mxu1 }
0x14df   :  { %v2139_v37 = vadd.f32 %v2138_v10, %v2063_v51  ;;  %v3004_v49 = vpop.f32.mrb[21].mxu1  ;;  %v3216_v10 = vpack.c.bf16 %v2445_v48, %v2444_v45 }
0x14e1   :  { %v2142_v15 = vadd.f32 %v3614_v8, %v2139_v37 }
0x14e3   :  { %v2615_v50 = vmul.f32 -1.442695, %v2142_v15  ;;  %v2624_v15 = vld [vmem:[%s3903_s10] ss:$0 sm:$0xff] }
0x14e5   :  { %3304 = vpow2.f32 %v2615_v50 }
0x14e6   :  { %v2236_v53 = vpop.f32.mrb[22].mxu1 }
0x14e7   :  { %v2240_v55 = vadd.f32 %v2236_v53, %v218_v47  ;;  %v3026_v56 = vpop.f32.mrb[23].mxu1 }
0x14e9   :  { %v2618_v63 = vmul.f32 -1.442695, %v2240_v55 }
0x14eb   :  { %3306 = vpow2.f32 %v2618_v63  ;;  %v2627_v63 = vld [vmem:[#allocation3] ss:$0 sm:$0xff] }
0x14ef   :  { %v3305_v54 = vpop.eup %3304 }
0x14f0   :  { %v2146_v57 = vadd.f32 1.0, %v3305_v54 }
0x14f2   :  { %3308 = vrcp.f32 %v2146_v57 }
0x14f5   :  { %v3307_v58 = vpop.eup %3306 }
0x14f6   :  { %v2244_v59 = vadd.f32 1.0, %v3307_v58 }
0x14f8   :  { %3310 = vrcp.f32 %v2244_v59 }
0x14fc   :  { %v3309_v4 = vpop.eup %3308 }
0x14fd   :  { %v2149_v5 = vmul.f32 2.0, %v3309_v4  ;;  %v2151_v14 = vmul.f32 %v3309_v4, %v3827_v35 }
0x14ff   :  { %v2616_v6 = vadd.f32 -1.0, %v2149_v5 }
0x1501   :  { %2153 = vrot.lane.b32.xlu0 %v2616_v6, %s3353_s26 }
0x1502   :  { %v3311_v7 = vpop.eup %3310 }
0x1503   :  { %v2247_v9 = vmul.f32 2.0, %v3311_v7  ;;  %v2249_v20 = vmul.f32 %v3311_v7, %v3831_v39 }
0x1505   :  { %v2619_v0 = vadd.f32 -1.0, %v2247_v9 }
0x1507   :  { %2251 = vrot.lane.b32.xlu1 %v2619_v0, %s3353_s26 }
0x1573   :  { %v2154_v11 = vpop.permute.xlu0 %2153 }
0x1574   :  { %v2156_v12 = vmul.f32 %v3309_v4, %v2154_v11 }
0x1576   :  { %2158 = vrot.lane.b32.xlu0 %v2156_v12, %s3354_s28 }
0x1579   :  { %v2252_v60 = vpop.permute.xlu1 %2251 }
0x157a   :  { %v2254_v13 = vmul.f32 %v3311_v7, %v2252_v60 }
0x157c   :  { %2256 = vrot.lane.b32.xlu1 %v2254_v13, %s3354_s28 }
0x15e8   :  { %v2159_v16 = vpop.permute.xlu0 %2158 }
0x15e9   :  { %v2161_v17 = vadd.f32 %v2159_v16, %v2151_v14 }
0x15eb   :  { %3312 = vtanh.f32 %v2161_v17 }
0x15ee   :  { %v2257_v21 = vpop.permute.xlu1 %2256 }
0x15ef   :  { %v2259_v22 = vadd.f32 %v2257_v21, %v2249_v20 }
0x15f1   :  { %3314 = vtanh.f32 %v2259_v22 }
0x15f5   :  { %v3313_v23 = vpop.eup %3312 }
0x15f6   :  { %2164 = vrot.lane.b32.xlu0 %v3313_v23, %s3353_s26 }
0x15fb   :  { %v3315_v61 = vpop.eup %3314 }
0x15fc   :  { %2262 = vrot.lane.b32.xlu1 %v3315_v61, %s3353_s26 }
0x1668   :  { %v2165_v24 = vpop.permute.xlu0 %2164 }
0x1669   :  { %v2167_v25 = vmul.f32 %v3309_v4, %v2165_v24 }
0x166b   :  { %2342 = vrot.lane.b32.xlu1 %v2167_v25, %s3354_s28 }
0x166e   :  { %v2263_v26 = vpop.permute.xlu1 %2262 }
0x166f   :  { %v2265_v27 = vmul.f32 %v3311_v7, %v2263_v26 }
0x1671   :  { %2267 = vrot.lane.b32.xlu0 %v2265_v27, %s3354_s28 }
0x16dd   :  { %v2343_v28 = vpop.permute.xlu1 %2342 }
0x16de   :  { %3047 = vmatmul.mubr.msk.f32.vlgmr.msra.gmra.mrb[24].mxu1 %vm91_vm1, %v2343_v28 }
0x16e3   :  { %v2268_v29 = vpop.permute.xlu0 %2267 }
0x16e4   :  { %3036 = vmatmul.mubr.msk.f32.vlgmr.msra.gmra.mrb[28].mxu0 %vm91_vm1, %v2268_v29 }
0x16e5   :  { %3057 = vmatprep.mubr.msk.f32.mxu0 %vm3351_vm0, %v3352_v2 }
0x17b1   :  { %v2412_v19 = vpop.f32.mrb[24].mxu1 }
0x17b2   :  { %v3048_v18 = vpop.f32.mrb[25].mxu1 }
0x17b7   :  { %v2337_v3 = vpop.f32.mrb[28].mxu0 }
0x17b8   :  { %v2413_v30 = vadd.f32 %v2412_v19, %v2337_v3  ;;  %v3037_v31 = vpop.f32.mrb[29].mxu0 }
0x17ba   :  { %v2416_v32 = vadd.f32 %v3614_v8, %v2413_v30  ;;  %v2443_v8 = vld [vmem:[#allocation4 + $0x8] sm:$0xff] }
0x17bb   :  { %v3213_v46 = vpack.c.bf16 %v2443_v8, %v2442_v44 }
0x17bc   :  { %v2622_v33 = vmul.f32 -1.442695, %v2416_v32 }
0x17bd   :  { %3214 = vmatpush3.bf16.msra.mxu0 %v3213_v46 }
0x17be   :  { %3316 = vpow2.f32 %v2622_v33  ;;  %3215 = vmatprep.subr.bf16.mxu0 %v3350_v1  ;;  %v2626_v1 = vld [vmem:[%s3904_s11] ss:$0 sm:$0xff] }
0x17c1   :  { %3217 = vmatpush3.bf16.msra.mxu0 %v3216_v10 }
0x17c8   :  { %v3317_v34 = vpop.eup %3316 }
0x17c9   :  { %v2420_v35 = vadd.f32 1.0, %v3317_v34 }
0x17cb   :  { %3318 = vrcp.f32 %v2420_v35 }
0x17d5   :  { %v3319_v36 = vpop.eup %3318 }
0x17d6   :  { %v2423_v38 = vmul.f32 2.0, %v3319_v36  ;;  %v2425_v2 = vmul.f32 %v3319_v36, %v2161_v17 }
0x17d8   :  { %v2623_v39 = vadd.f32 -1.0, %v2423_v38 }
0x17da   :  { %2427 = vrot.lane.b32.xlu0 %v2623_v39, %s3353_s26 }
0x184c   :  { %v2428_v41 = vpop.permute.xlu0 %2427 }
0x184d   :  { %v2430_v40 = vmul.f32 %v3319_v36, %v2428_v41 }
0x184f   :  { %2432 = vrot.lane.b32.xlu1 %v2430_v40, %s3354_s28 }
0x18c1   :  { %v2433_v42 = vpop.permute.xlu1 %2432 }
0x18c2   :  { %v2435_v62 = vadd.f32 %v2433_v42, %v2425_v2 }
0x18c4   :  { %3320 = vtanh.f32 %v2435_v62 }
0x18ce   :  { %v3321_v43 = vpop.eup %3320 }
0x18cf   :  { %2438 = vrot.lane.b32.xlu0 %v3321_v43, %s3353_s26 }
0x1941   :  { %v2439_v51 = vpop.permute.xlu0 %2438 }
0x1942   :  { %v2441_v37 = vmul.f32 %v3319_v36, %v2439_v51 }
0x1944   :  { %2454 = vrot.lane.b32.xlu1 %v2441_v37, %s3354_s28 }
0x19b6   :  { %v2455_v49 = vpop.permute.xlu1 %2454 }
0x19b7   :  { %3058 = vmatmul.mubr.msk.f32.vlgmr.msra.gmra.mrb[30].mxu0 %vm91_vm1, %v2455_v49 }
0x1a8a   :  { %v2524_v50 = vpop.f32.mrb[30].mxu0 }
0x1a8b   :  { %v2525_v52 = vadd.f32 %v2624_v15, %v2524_v50  ;;  %v3059_v47 = vpop.f32.mrb[31].mxu0 }
0x1a8d   :  { %v2528_v53 = vmax.f32 %v2525_v52, 0.0 }
0x1a8f   :  { %v2536_v55 = vmul.f32 %v2626_v1, %v2528_v53 }
0x1a91   :  { %v2538_v56 = vsel %vm2537_vm2, %v2536_v55, 0.0 }
0x1a92   :  { %2539 = vadd.xlane.f32.xlu0 %v2538_v56 }
0x1b1f   :  { %v2540_v54 = vpop.xlane.xlu0 %2539 }
0x1b20   :  { %v2548_v57 = vadd.f32 %v2627_v63, %v2540_v54 }
0x1b22   :  { %2550 = vst.msk [vmem:[%s3906_s13] sm:$0xff] %vm2549_vm3, %v2548_v57 }
0x1b23   :  { %2555 = vsyncpa [#allocation5], 1 }

</bundles_post_ra>
